<compile_context>
chip_gen: v7x
topology: tpu7x:2x2x1
jax: 0.10.0
libtpu: 0.0.40
codegen_flags: <defaults>
</compile_context>

<pallas_src>
import functools
import math

import jax
import jax.numpy as jnp
from jax import lax
from jax.experimental import pallas as pl
from jax.experimental.pallas import tpu as pltpu

_SQRT2 = math.sqrt(2.0)


def _round_up(n, m):
    return ((n + m - 1) // m) * m


def _erfinv(x):
    """Single-precision erfinv (Giles 2012 rational approximation).

    Elementwise only (log/sqrt/mul/add/where) so it lowers cleanly on the
    VPU + EUP inside a Pallas TPU kernel.  Kept in f32 (v5e has no bf16 VPU).
    """
    w = -jnp.log((1.0 - x) * (1.0 + x))

    # |erfinv| small branch (w < 5)
    ws = w - 2.5
    ps = jnp.float32(2.81022636e-08)
    ps = 3.43273939e-07 + ps * ws
    ps = -3.5233877e-06 + ps * ws
    ps = -4.39150654e-06 + ps * ws
    ps = 0.00021858087 + ps * ws
    ps = -0.00125372503 + ps * ws
    ps = -0.00417768164 + ps * ws
    ps = 0.246640727 + ps * ws
    ps = 1.50140941 + ps * ws

    # tail branch (w >= 5)
    wb = jnp.sqrt(w) - 3.0
    pb = jnp.float32(-0.000200214257)
    pb = 0.000100950558 + pb * wb
    pb = 0.00134934322 + pb * wb
    pb = -0.00367342844 + pb * wb
    pb = 0.00573950773 + pb * wb
    pb = -0.0076224613 + pb * wb
    pb = 0.00943887047 + pb * wb
    pb = 1.00167406 + pb * wb
    pb = 2.83297682 + pb * wb

    p = jnp.where(w < 5.0, ps, pb)
    return p * x


def _probit(x, eps):
    x = jnp.clip(x, eps, 1.0 - eps)
    return _SQRT2 * _erfinv(2.0 * x - 1.0)


def _pearson_kernel(zsum_ref, x_ref, y_ref, z_ref, o_ref, row_acc,
                    *, eps, b_actual, tb):
    bi = pl.program_id(0)          # batch-tile index  (outer, "parallel")
    fj = pl.program_id(1)          # feature-tile index (inner reduction)
    nf = pl.num_programs(1)

    # ---- per-B-tile row accumulator: zero at the start of every F sweep ----
    @pl.when(fj == 0)
    def _init_tile():
        row_acc[...] = jnp.zeros_like(row_acc)

    # X and z stay in their native dtype (bf16 streams narrow through the
    # MXU); accumulation is f32.  z is broadcast across the 128 lanes so the
    # dot result / accumulator is lane-dense (identical columns, unmasked
    # stores) — the MXU time is the same as for the degenerate N=1 shape.
    x = x_ref[...]                                      # (tb, tf)
    z = z_ref[...]                                      # (tf, 1)
    zb = jnp.broadcast_to(z, (z.shape[0], 128))         # (tf, 128)
    row_acc[...] += jnp.dot(x, zb, preferred_element_type=jnp.float32)

    # ---- finish this B tile at the last F tile ----
    @pl.when(fj == nf - 1)
    def _finish_batch_tile():
        inv_zsum = 1.0 / zsum_ref[0]                    # Σz + 1e-6, from wrapper
        x_z = row_acc[:, 0:1] * inv_zsum                # (tb, 1) (all cols equal)
        y = y_ref[...].astype(jnp.float32)              # (tb, 1)

        x_t = _probit(x_z, eps)
        y_t = _probit(y, eps)

        # Mask rows that only exist because of tile padding.  The padded
        # rows' probit is finite (clip happens before the mask) as long as
        # eps > 0 — keep that invariant.
        row_ids = bi * tb + lax.broadcasted_iota(jnp.int32, (tb, 1), 0)
        mask = (row_ids < b_actual).astype(jnp.float32)
        x_m = x_t * mask
        y_m = y_t * mask

        sx = jnp.sum(x_m)
        sy = jnp.sum(y_m)
        sxy = jnp.sum(x_m * y_m)
        sxx = jnp.sum(x_m * x_m)
        syy = jnp.sum(y_m * y_m)

        # Pack the 5 partial sums into rows 0..4 of this B tile's (1,8,128)
        # output block (exactly one vreg, lane-dense unmasked store).
        rid = lax.broadcasted_iota(jnp.int32, (1, 8, 128), 1)
        blk = (jnp.where(rid == 0, sx, 0.0)
               + jnp.where(rid == 1, sy, 0.0)
               + jnp.where(rid == 2, sxy, 0.0)
               + jnp.where(rid == 3, sxx, 0.0)
               + jnp.where(rid == 4, syy, 0.0))
        o_ref[...] = blk.astype(jnp.float32)


def pearson_r_loss(X, y, z, eps=1e-6, *, block_b=None, block_f=None,
                   x_buffers=2):
    """Pallas TPU implementation of PearsonRLoss.forward (probit transform).

    Jit-compatible: returns the scalar correlation; NaN handling is left to
    the caller (no host sync in the hot path).
    """
    B, F = X.shape
    x_item = jnp.dtype(X.dtype).itemsize

    # Lane-dense, (8,128)-aligned tiles; ~8 MiB X tile by default (tf doubles
    # automatically for bf16) so per-grid-step overhead is amortized.
    if block_b is None:
        tb = min(1024, _round_up(B, 8))
    else:
        tb = _round_up(int(block_b), 8)
    if block_f is None:
        tf = max(128, ((8 * 1024 * 1024) // (tb * x_item)) // 128 * 128)
        tf = min(tf, _round_up(F, 128), 32768)
    else:
        tf = _round_up(int(block_f), 128)
    Bp = _round_up(B, tb)
    Fp = _round_up(F, tf)
    nb, nf = Bp // tb, Fp // tf

    y2 = jnp.reshape(y, (B, 1)).astype(jnp.float32)
    z2 = jnp.reshape(z, (F, 1)).astype(X.dtype)       # keep the dot narrow
    # Σz (+1e-6, matching the reference) hoisted out of the grid entirely.
    z_sum = (jnp.sum(z.astype(jnp.float32)) + 1e-6).reshape((1,))

    # Pad to tile multiples.  Zero-padded X columns / z rows contribute
    # nothing to X@z; padded batch rows are masked out inside the kernel
    # (y padded with 0.5 only to keep the probit input in-range).
    if Bp != B:
        X = jnp.pad(X, ((0, Bp - B), (0, 0)))
        y2 = jnp.pad(y2, ((0, Bp - B), (0, 0)), constant_values=0.5)
    if Fp != F:
        X = jnp.pad(X, ((0, 0), (0, Fp - F)))
        z2 = jnp.pad(z2, ((0, Fp - F), (0, 0)))

    kernel = functools.partial(
        _pearson_kernel, eps=float(eps), b_actual=int(B), tb=int(tb))

    # X tile spec; on v7x it can pay to sweep x_buffers=3 (hides the probit
    # spike on the last F step behind one extra in-flight tile).
    if int(x_buffers) != 2:
        x_spec = pl.BlockSpec((tb, tf), lambda bi, fj: (bi, fj),
                              pipeline_mode=pl.Buffered(int(x_buffers)))
    else:
        x_spec = pl.BlockSpec((tb, tf), lambda bi, fj: (bi, fj))

    # Scoped VMEM: buffered X tiles + lane-padded y/z tiles + row_acc.
    z_item = jnp.dtype(z2.dtype).itemsize
    est_vmem = (max(2, int(x_buffers)) * tb * tf * x_item
                + 2 * (tb * 128 * 4 + tf * 128 * z_item + 8 * 128 * 4)
                + tb * 128 * 4)
    vmem_limit = int(max(32 << 20, min(est_vmem + (8 << 20), 64 << 20)))

    cost = pl.CostEstimate(
        flops=int(2 * Bp * Fp),
        transcendentals=int(4 * Bp),
        bytes_accessed=int(Bp * Fp * x_item + Bp * 4 + nb * Fp * z_item
                           + nb * 8 * 128 * 4),
    )

    partials = pl.pallas_call(
        kernel,
        out_shape=jax.ShapeDtypeStruct((nb, 8, 128), jnp.float32),
        grid_spec=pltpu.PrefetchScalarGridSpec(
            num_scalar_prefetch=0,
            grid=(nb, nf),
            in_specs=[
                pl.BlockSpec(memory_space=pltpu.MemorySpace.SMEM),  # Σz scalar
                x_spec,                                             # X tile
                pl.BlockSpec((tb, 1), lambda bi, fj: (bi, 0)),      # y tile
                pl.BlockSpec((tf, 1), lambda bi, fj: (fj, 0)),      # z tile
            ],
            out_specs=pl.BlockSpec((1, 8, 128), lambda bi, fj: (bi, 0, 0)),
            scratch_shapes=[
                pltpu.VMEM((tb, 128), jnp.float32),   # row_acc: Σ_f X·z per row
            ],
        ),
        compiler_params=pltpu.CompilerParams(
            dimension_semantics=("parallel", "arbitrary"),
            vmem_limit_bytes=vmem_limit),
        cost_estimate=cost,
    )(z_sum, X, y2, z2)

    # Finalize: O(nb) partial-sum reduction + scalar math (plain JAX, jittable).
    # Note: one-pass E[x²]-mean² variance in f32; adequate at this tolerance
    # since the probit outputs are roughly zero-mean.
    s = jnp.sum(partials[:, :5, 0], axis=0)
    inv_n = jnp.float32(1.0 / B)
    mean_x = s[0] * inv_n
    mean_y = s[1] * inv_n
    cov = s[2] * inv_n - mean_x * mean_y
    x_var = s[3] * inv_n - mean_x * mean_x + eps
    y_var = s[4] * inv_n - mean_y * mean_y + eps
    return cov / jnp.sqrt(x_var * y_var)


def _reference(X, y, z, eps=1e-6):
    """Pure-JAX reference mirroring the PyTorch module."""
    def probit(t):
        t = jnp.clip(t, eps, 1.0 - eps)
        return _SQRT2 * jax.scipy.special.erfinv(2.0 * t - 1.0)

    z_sum = z.sum() + 1e-6
    x_z = X @ z / z_sum
    x_t = probit(x_z)
    y_t = probit(y)
    x_c = x_t - jnp.mean(x_t)
    y_c = y_t - jnp.mean(y_t)
    cov = jnp.mean(x_c * y_c)
    x_var = jnp.mean(x_c ** 2) + eps
    y_var = jnp.mean(y_c ** 2) + eps
    return cov / jnp.sqrt(x_var * y_var)


if __name__ == "__main__":
    key = jax.random.PRNGKey(0)
    kx, ky, kz = jax.random.split(key, 3)

    # Small, deliberately non-tile-aligned shapes (exercise padding + masking).
    B, F = 30, 500
    X = jax.random.uniform(kx, (B, F), dtype=jnp.float32, minval=0.02, maxval=0.98)
    y = jax.random.uniform(ky, (B,), dtype=jnp.float32, minval=0.02, maxval=0.98)
    z = jax.random.uniform(kz, (F,), dtype=jnp.float32, minval=0.1, maxval=1.0)

    ref = jax.block_until_ready(_reference(X, y, z))

    # 1) default (auto) tile sizes -> single-tile grid path.
    corr1 = jax.block_until_ready(jax.jit(pearson_r_loss)(X, y, z))
    assert abs(float(corr1) - float(ref)) < 2e-3, (float(corr1), float(ref))

    # 2) forced small tiles -> (4, 4) grid; exercises F accumulation and the
    #    per-B-tile partial-sum path (parallel B axis, JAX finalize over nb).
    tiled_loss = jax.jit(functools.partial(pearson_r_loss, block_b=8, block_f=128))
    corr2 = jax.block_until_ready(tiled_loss(X, y, z))
    assert abs(float(corr2) - float(ref)) < 2e-3, (float(corr2), float(ref))

    # 3) bf16 X/z stream natively through the MXU (f32 accumulate / probit);
    #    compare against the reference evaluated on the same rounded inputs.
    Xb = X.astype(jnp.bfloat16)
    zb = z.astype(jnp.bfloat16)
    ref_b = jax.block_until_ready(
        _reference(Xb.astype(jnp.float32), y, zb.astype(jnp.float32)))
    corr3 = jax.block_until_ready(jax.jit(pearson_r_loss)(Xb, y, zb))
    assert abs(float(corr3) - float(ref_b)) < 2e-3, (float(corr3), float(ref_b))

    print("KERNEL_OK")
</pallas_src>

<mosaic_0001>
module attributes {stable_mosaic.version = 11 : i64} {
  func.func @_pearson_kernel(%arg0: i32, %arg1: i32, %arg2: memref<1xf32, #tpu.memory_space<smem>>, %arg3: memref<32x512xf32, #tpu.memory_space<vmem>>, %arg4: memref<32x1xf32, #tpu.memory_space<vmem>>, %arg5: memref<512x1xf32, #tpu.memory_space<vmem>>, %arg6: memref<1x8x128xf32, #tpu.memory_space<vmem>>, %arg7: memref<32x128xf32, #tpu.memory_space<vmem>>) attributes {dimension_semantics = [#tpu.dimension_semantics<parallel>, #tpu.dimension_semantics<arbitrary>], iteration_bounds = array<i64: 1, 1>, scalar_prefetch = 0 : i64, scratch_operands = 1 : i64, tpu.core_type = #tpu.core_type<tc>, window_params = [{transform_indices = @transform_0, window_bounds = array<i64: 1>}, {transform_indices = @transform_1, window_bounds = array<i64: 32, 512>}, {transform_indices = @transform_2, window_bounds = array<i64: 32, 1>}, {transform_indices = @transform_3, window_bounds = array<i64: 512, 1>}, {transform_indices = @transform_4, window_bounds = array<i64: 1, 8, 128>}]} {
    %c0_i32 = arith.constant 0 : i32
    %0 = arith.cmpi eq, %arg1, %c0_i32 : i32
    %1 = arith.extui %0 : i1 to i32
    %c0_i32_0 = arith.constant 0 : i32
    %2 = arith.cmpi ne, %1, %c0_i32_0 : i32
    scf.if %2 {
      %cst_10 = arith.constant 0.000000e+00 : f32
      %14 = vector.broadcast %cst_10 : f32 to vector<32x128xf32>
      %c0_11 = arith.constant 0 : index
      %c0_12 = arith.constant 0 : index
      %15 = vector.load %arg7[%c0_11, %c0_12] : memref<32x128xf32, #tpu.memory_space<vmem>>, vector<32x128xf32>
      tpu.vector_store %arg7[%c0_11, %c0_12], %14 {strides = array<i32>} : memref<32x128xf32, #tpu.memory_space<vmem>>, vector<32x128xf32>,
    } else {
    }
    %c0 = arith.constant 0 : index
    %c0_1 = arith.constant 0 : index
    %3 = vector.load %arg3[%c0, %c0_1] : memref<32x512xf32, #tpu.memory_space<vmem>>, vector<32x512xf32>
    %c0_2 = arith.constant 0 : index
    %c0_3 = arith.constant 0 : index
    %4 = vector.load %arg5[%c0_2, %c0_3] : memref<512x1xf32, #tpu.memory_space<vmem>>, vector<512x1xf32>
    %5 = vector.shape_cast %4 : vector<512x1xf32> to vector<512x1xf32>
    %6 = vector.broadcast %5 : vector<512x1xf32> to vector<512x128xf32>
    %c0_4 = arith.constant 0 : index
    %c0_5 = arith.constant 0 : index
    %7 = vector.load %arg7[%c0_4, %c0_5] : memref<32x128xf32, #tpu.memory_space<vmem>>, vector<32x128xf32>
    %cst = arith.constant dense<0.000000e+00> : vector<32x128xf32>
    %8 = tpu.matmul %3, %6, %cst {dimension_numbers = #tpu.dot_dimension_numbers<[1], [0], [0], [1], [0, 0, 1, 1], [], []>} : vector<32x512xf32>, vector<512x128xf32>, vector<32x128xf32> -> vector<32x128xf32>
    %9 = arith.addf %7, %8 : vector<32x128xf32>
    %c0_6 = arith.constant 0 : index
    %c0_7 = arith.constant 0 : index
    %10 = vector.load %arg7[%c0_6, %c0_7] : memref<32x128xf32, #tpu.memory_space<vmem>>, vector<32x128xf32>
    tpu.vector_store %arg7[%c0_6, %c0_7], %9 {strides = array<i32>} : memref<32x128xf32, #tpu.memory_space<vmem>>, vector<32x128xf32>,
    %c0_i32_8 = arith.constant 0 : i32
    %11 = arith.cmpi eq, %arg1, %c0_i32_8 : i32
    %12 = arith.extui %11 : i1 to i32
    %c0_i32_9 = arith.constant 0 : i32
    %13 = arith.cmpi ne, %12, %c0_i32_9 : i32
    scf.if %13 {
      %c0_10 = arith.constant 0 : index
      %14 = memref.load %arg2[%c0_10] : memref<1xf32, #tpu.memory_space<smem>>
      %cst_11 = arith.constant 1.000000e+00 : f32
      %15 = arith.divf %cst_11, %14 : f32
      %c0_12 = arith.constant 0 : index
      %c0_13 = arith.constant 0 : index
      %16 = vector.load %arg7[%c0_12, %c0_13] : memref<32x128xf32, #tpu.memory_space<vmem>>, vector<32x1xf32>
      %17 = vector.broadcast %15 : f32 to vector<32x1xf32>
      %18 = arith.mulf %16, %17 : vector<32x1xf32>
      %c0_14 = arith.constant 0 : index
      %c0_15 = arith.constant 0 : index
      %19 = vector.load %arg4[%c0_14, %c0_15] : memref<32x1xf32, #tpu.memory_space<vmem>>, vector<32x1xf32>
      %cst_16 = arith.constant 9.99999997E-7 : f32
      %cst_17 = arith.constant 0.999998986 : f32
      %20 = vector.broadcast %cst_16 : f32 to vector<32x1xf32>
      %21 = arith.maximumf %20, %18 : vector<32x1xf32>
      %22 = vector.broadcast %cst_17 : f32 to vector<32x1xf32>
      %23 = arith.minimumf %22, %21 : vector<32x1xf32>
      %cst_18 = arith.constant 2.000000e+00 : f32
      %24 = vector.broadcast %cst_18 : f32 to vector<32x1xf32>
      %25 = arith.mulf %24, %23 : vector<32x1xf32>
      %cst_19 = arith.constant 1.000000e+00 : f32
      %26 = vector.broadcast %cst_19 : f32 to vector<32x1xf32>
      %27 = arith.subf %25, %26 : vector<32x1xf32>
      %cst_20 = arith.constant 1.000000e+00 : f32
      %28 = vector.broadcast %cst_20 : f32 to vector<32x1xf32>
      %29 = arith.subf %28, %27 : vector<32x1xf32>
      %cst_21 = arith.constant 1.000000e+00 : f32
      %30 = vector.broadcast %cst_21 : f32 to vector<32x1xf32>
      %31 = arith.addf %30, %27 : vector<32x1xf32>
      %32 = arith.mulf %29, %31 : vector<32x1xf32>
      %33 = math.log %32 : vector<32x1xf32>
      %cst_22 = arith.constant 0.000000e+00 : f32
      %34 = vector.broadcast %cst_22 : f32 to vector<32x1xf32>
      %35 = arith.subf %34, %33 : vector<32x1xf32>
      %cst_23 = arith.constant 2.500000e+00 : f32
      %36 = vector.broadcast %cst_23 : f32 to vector<32x1xf32>
      %37 = arith.subf %35, %36 : vector<32x1xf32>
      %cst_24 = arith.constant 2.81022636E-8 : f32
      %38 = vector.broadcast %cst_24 : f32 to vector<32x1xf32>
      %39 = arith.mulf %38, %37 : vector<32x1xf32>
      %cst_25 = arith.constant 3.43273939E-7 : f32
      %40 = vector.broadcast %cst_25 : f32 to vector<32x1xf32>
      %41 = arith.addf %40, %39 : vector<32x1xf32>
      %42 = arith.mulf %41, %37 : vector<32x1xf32>
      %cst_26 = arith.constant -3.5233877E-6 : f32
      %43 = vector.broadcast %cst_26 : f32 to vector<32x1xf32>
      %44 = arith.addf %43, %42 : vector<32x1xf32>
      %45 = arith.mulf %44, %37 : vector<32x1xf32>
      %cst_27 = arith.constant -4.39150654E-6 : f32
      %46 = vector.broadcast %cst_27 : f32 to vector<32x1xf32>
      %47 = arith.addf %46, %45 : vector<32x1xf32>
      %48 = arith.mulf %47, %37 : vector<32x1xf32>
      %cst_28 = arith.constant 2.1858087E-4 : f32
      %49 = vector.broadcast %cst_28 : f32 to vector<32x1xf32>
      %50 = arith.addf %49, %48 : vector<32x1xf32>
      %51 = arith.mulf %50, %37 : vector<32x1xf32>
      %cst_29 = arith.constant -0.00125372503 : f32
      %52 = vector.broadcast %cst_29 : f32 to vector<32x1xf32>
      %53 = arith.addf %52, %51 : vector<32x1xf32>
      %54 = arith.mulf %53, %37 : vector<32x1xf32>
      %cst_30 = arith.constant -0.00417768164 : f32
      %55 = vector.broadcast %cst_30 : f32 to vector<32x1xf32>
      %56 = arith.addf %55, %54 : vector<32x1xf32>
      %57 = arith.mulf %56, %37 : vector<32x1xf32>
      %cst_31 = arith.constant 0.246640727 : f32
      %58 = vector.broadcast %cst_31 : f32 to vector<32x1xf32>
      %59 = arith.addf %58, %57 : vector<32x1xf32>
      %60 = arith.mulf %59, %37 : vector<32x1xf32>
      %cst_32 = arith.constant 1.50140941 : f32
      %61 = vector.broadcast %cst_32 : f32 to vector<32x1xf32>
      %62 = arith.addf %61, %60 : vector<32x1xf32>
      %63 = math.sqrt %35 : vector<32x1xf32>
      %cst_33 = arith.constant 3.000000e+00 : f32
      %64 = vector.broadcast %cst_33 : f32 to vector<32x1xf32>
      %65 = arith.subf %63, %64 : vector<32x1xf32>
      %cst_34 = arith.constant -2.00214257E-4 : f32
      %66 = vector.broadcast %cst_34 : f32 to vector<32x1xf32>
      %67 = arith.mulf %66, %65 : vector<32x1xf32>
      %cst_35 = arith.constant 1.00950558E-4 : f32
      %68 = vector.broadcast %cst_35 : f32 to vector<32x1xf32>
      %69 = arith.addf %68, %67 : vector<32x1xf32>
      %70 = arith.mulf %69, %65 : vector<32x1xf32>
      %cst_36 = arith.constant 0.00134934322 : f32
      %71 = vector.broadcast %cst_36 : f32 to vector<32x1xf32>
      %72 = arith.addf %71, %70 : vector<32x1xf32>
      %73 = arith.mulf %72, %65 : vector<32x1xf32>
      %cst_37 = arith.constant -0.00367342844 : f32
      %74 = vector.broadcast %cst_37 : f32 to vector<32x1xf32>
      %75 = arith.addf %74, %73 : vector<32x1xf32>
      %76 = arith.mulf %75, %65 : vector<32x1xf32>
      %cst_38 = arith.constant 0.00573950773 : f32
      %77 = vector.broadcast %cst_38 : f32 to vector<32x1xf32>
      %78 = arith.addf %77, %76 : vector<32x1xf32>
      %79 = arith.mulf %78, %65 : vector<32x1xf32>
      %cst_39 = arith.constant -0.0076224613 : f32
      %80 = vector.broadcast %cst_39 : f32 to vector<32x1xf32>
      %81 = arith.addf %80, %79 : vector<32x1xf32>
      %82 = arith.mulf %81, %65 : vector<32x1xf32>
      %cst_40 = arith.constant 0.00943887047 : f32
      %83 = vector.broadcast %cst_40 : f32 to vector<32x1xf32>
      %84 = arith.addf %83, %82 : vector<32x1xf32>
      %85 = arith.mulf %84, %65 : vector<32x1xf32>
      %cst_41 = arith.constant 1.00167406 : f32
      %86 = vector.broadcast %cst_41 : f32 to vector<32x1xf32>
      %87 = arith.addf %86, %85 : vector<32x1xf32>
      %88 = arith.mulf %87, %65 : vector<32x1xf32>
      %cst_42 = arith.constant 2.83297682 : f32
      %89 = vector.broadcast %cst_42 : f32 to vector<32x1xf32>
      %90 = arith.addf %89, %88 : vector<32x1xf32>
      %cst_43 = arith.constant 5.000000e+00 : f32
      %91 = vector.broadcast %cst_43 : f32 to vector<32x1xf32>
      %92 = arith.cmpf olt, %35, %91 : vector<32x1xf32>
      %93 = arith.select %92, %62, %90 : vector<32x1xi1>, vector<32x1xf32>
      %94 = arith.mulf %93, %27 : vector<32x1xf32>
      %cst_44 = arith.constant 1.41421354 : f32
      %95 = vector.broadcast %cst_44 : f32 to vector<32x1xf32>
      %96 = arith.mulf %95, %94 : vector<32x1xf32>
      %cst_45 = arith.constant 9.99999997E-7 : f32
      %cst_46 = arith.constant 0.999998986 : f32
      %97 = vector.broadcast %cst_45 : f32 to vector<32x1xf32>
      %98 = arith.maximumf %97, %19 : vector<32x1xf32>
      %99 = vector.broadcast %cst_46 : f32 to vector<32x1xf32>
      %100 = arith.minimumf %99, %98 : vector<32x1xf32>
      %cst_47 = arith.constant 2.000000e+00 : f32
      %101 = vector.broadcast %cst_47 : f32 to vector<32x1xf32>
      %102 = arith.mulf %101, %100 : vector<32x1xf32>
      %cst_48 = arith.constant 1.000000e+00 : f32
      %103 = vector.broadcast %cst_48 : f32 to vector<32x1xf32>
      %104 = arith.subf %102, %103 : vector<32x1xf32>
      %cst_49 = arith.constant 1.000000e+00 : f32
      %105 = vector.broadcast %cst_49 : f32 to vector<32x1xf32>
      %106 = arith.subf %105, %104 : vector<32x1xf32>
      %cst_50 = arith.constant 1.000000e+00 : f32
      %107 = vector.broadcast %cst_50 : f32 to vector<32x1xf32>
      %108 = arith.addf %107, %104 : vector<32x1xf32>
      %109 = arith.mulf %106, %108 : vector<32x1xf32>
      %110 = math.log %109 : vector<32x1xf32>
      %cst_51 = arith.constant 0.000000e+00 : f32
      %111 = vector.broadcast %cst_51 : f32 to vector<32x1xf32>
      %112 = arith.subf %111, %110 : vector<32x1xf32>
      %cst_52 = arith.constant 2.500000e+00 : f32
      %113 = vector.broadcast %cst_52 : f32 to vector<32x1xf32>
      %114 = arith.subf %112, %113 : vector<32x1xf32>
      %cst_53 = arith.constant 2.81022636E-8 : f32
      %115 = vector.broadcast %cst_53 : f32 to vector<32x1xf32>
      %116 = arith.mulf %115, %114 : vector<32x1xf32>
      %cst_54 = arith.constant 3.43273939E-7 : f32
      %117 = vector.broadcast %cst_54 : f32 to vector<32x1xf32>
      %118 = arith.addf %117, %116 : vector<32x1xf32>
      %119 = arith.mulf %118, %114 : vector<32x1xf32>
      %cst_55 = arith.constant -3.5233877E-6 : f32
      %120 = vector.broadcast %cst_55 : f32 to vector<32x1xf32>
      %121 = arith.addf %120, %119 : vector<32x1xf32>
      %122 = arith.mulf %121, %114 : vector<32x1xf32>
      %cst_56 = arith.constant -4.39150654E-6 : f32
      %123 = vector.broadcast %cst_56 : f32 to vector<32x1xf32>
      %124 = arith.addf %123, %122 : vector<32x1xf32>
      %125 = arith.mulf %124, %114 : vector<32x1xf32>
      %cst_57 = arith.constant 2.1858087E-4 : f32
      %126 = vector.broadcast %cst_57 : f32 to vector<32x1xf32>
      %127 = arith.addf %126, %125 : vector<32x1xf32>
      %128 = arith.mulf %127, %114 : vector<32x1xf32>
      %cst_58 = arith.constant -0.00125372503 : f32
      %129 = vector.broadcast %cst_58 : f32 to vector<32x1xf32>
      %130 = arith.addf %129, %128 : vector<32x1xf32>
      %131 = arith.mulf %130, %114 : vector<32x1xf32>
      %cst_59 = arith.constant -0.00417768164 : f32
      %132 = vector.broadcast %cst_59 : f32 to vector<32x1xf32>
      %133 = arith.addf %132, %131 : vector<32x1xf32>
      %134 = arith.mulf %133, %114 : vector<32x1xf32>
      %cst_60 = arith.constant 0.246640727 : f32
      %135 = vector.broadcast %cst_60 : f32 to vector<32x1xf32>
      %136 = arith.addf %135, %134 : vector<32x1xf32>
      %137 = arith.mulf %136, %114 : vector<32x1xf32>
      %cst_61 = arith.constant 1.50140941 : f32
      %138 = vector.broadcast %cst_61 : f32 to vector<32x1xf32>
      %139 = arith.addf %138, %137 : vector<32x1xf32>
      %140 = math.sqrt %112 : vector<32x1xf32>
      %cst_62 = arith.constant 3.000000e+00 : f32
      %141 = vector.broadcast %cst_62 : f32 to vector<32x1xf32>
      %142 = arith.subf %140, %141 : vector<32x1xf32>
      %cst_63 = arith.constant -2.00214257E-4 : f32
      %143 = vector.broadcast %cst_63 : f32 to vector<32x1xf32>
      %144 = arith.mulf %143, %142 : vector<32x1xf32>
      %cst_64 = arith.constant 1.00950558E-4 : f32
      %145 = vector.broadcast %cst_64 : f32 to vector<32x1xf32>
      %146 = arith.addf %145, %144 : vector<32x1xf32>
      %147 = arith.mulf %146, %142 : vector<32x1xf32>
      %cst_65 = arith.constant 0.00134934322 : f32
      %148 = vector.broadcast %cst_65 : f32 to vector<32x1xf32>
      %149 = arith.addf %148, %147 : vector<32x1xf32>
      %150 = arith.mulf %149, %142 : vector<32x1xf32>
      %cst_66 = arith.constant -0.00367342844 : f32
      %151 = vector.broadcast %cst_66 : f32 to vector<32x1xf32>
      %152 = arith.addf %151, %150 : vector<32x1xf32>
      %153 = arith.mulf %152, %142 : vector<32x1xf32>
      %cst_67 = arith.constant 0.00573950773 : f32
      %154 = vector.broadcast %cst_67 : f32 to vector<32x1xf32>
      %155 = arith.addf %154, %153 : vector<32x1xf32>
      %156 = arith.mulf %155, %142 : vector<32x1xf32>
      %cst_68 = arith.constant -0.0076224613 : f32
      %157 = vector.broadcast %cst_68 : f32 to vector<32x1xf32>
      %158 = arith.addf %157, %156 : vector<32x1xf32>
      %159 = arith.mulf %158, %142 : vector<32x1xf32>
      %cst_69 = arith.constant 0.00943887047 : f32
      %160 = vector.broadcast %cst_69 : f32 to vector<32x1xf32>
      %161 = arith.addf %160, %159 : vector<32x1xf32>
      %162 = arith.mulf %161, %142 : vector<32x1xf32>
      %cst_70 = arith.constant 1.00167406 : f32
      %163 = vector.broadcast %cst_70 : f32 to vector<32x1xf32>
      %164 = arith.addf %163, %162 : vector<32x1xf32>
      %165 = arith.mulf %164, %142 : vector<32x1xf32>
      %cst_71 = arith.constant 2.83297682 : f32
      %166 = vector.broadcast %cst_71 : f32 to vector<32x1xf32>
      %167 = arith.addf %166, %165 : vector<32x1xf32>
      %cst_72 = arith.constant 5.000000e+00 : f32
      %168 = vector.broadcast %cst_72 : f32 to vector<32x1xf32>
      %169 = arith.cmpf olt, %112, %168 : vector<32x1xf32>
      %170 = arith.select %169, %139, %167 : vector<32x1xi1>, vector<32x1xf32>
      %171 = arith.mulf %170, %104 : vector<32x1xf32>
      %cst_73 = arith.constant 1.41421354 : f32
      %172 = vector.broadcast %cst_73 : f32 to vector<32x1xf32>
      %173 = arith.mulf %172, %171 : vector<32x1xf32>
      %c32_i32 = arith.constant 32 : i32
      %174 = arith.muli %arg0, %c32_i32 : i32
      %175 = tpu.iota {dimensions = array<i32: 0>} : vector<32x1xi32>
      %176 = vector.broadcast %174 : i32 to vector<32x1xi32>
      %177 = arith.addi %176, %175 : vector<32x1xi32>
      %c30_i32 = arith.constant 30 : i32
      %178 = vector.broadcast %c30_i32 : i32 to vector<32x1xi32>
      %179 = arith.cmpi slt, %177, %178 : vector<32x1xi32>
      %180 = arith.extui %179 : vector<32x1xi1> to vector<32x1xi32>
      %181 = arith.sitofp %180 : vector<32x1xi32> to vector<32x1xf32>
      %182 = arith.mulf %96, %181 : vector<32x1xf32>
      %183 = arith.mulf %173, %181 : vector<32x1xf32>
      %184 = vector.shape_cast %182 : vector<32x1xf32> to vector<1x32x1xf32>
      %cst_74 = arith.constant dense<0.000000e+00> : vector<1xf32>
      %185 = vector.multi_reduction <add>, %184, %cst_74 [1, 2] : vector<1x32x1xf32> to vector<1xf32>
      %186 = vector.shape_cast %185 : vector<1xf32> to vector<1x1x1xf32>
      %187 = vector.extract %186[0, 0, 0] : f32 from vector<1x1x1xf32>
      %188 = vector.shape_cast %183 : vector<32x1xf32> to vector<1x32x1xf32>
      %cst_75 = arith.constant dense<0.000000e+00> : vector<1xf32>
      %189 = vector.multi_reduction <add>, %188, %cst_75 [1, 2] : vector<1x32x1xf32> to vector<1xf32>
      %190 = vector.shape_cast %189 : vector<1xf32> to vector<1x1x1xf32>
      %191 = vector.extract %190[0, 0, 0] : f32 from vector<1x1x1xf32>
      %192 = arith.mulf %182, %183 : vector<32x1xf32>
      %193 = vector.shape_cast %192 : vector<32x1xf32> to vector<1x32x1xf32>
      %cst_76 = arith.constant dense<0.000000e+00> : vector<1xf32>
      %194 = vector.multi_reduction <add>, %193, %cst_76 [1, 2] : vector<1x32x1xf32> to vector<1xf32>
      %195 = vector.shape_cast %194 : vector<1xf32> to vector<1x1x1xf32>
      %196 = vector.extract %195[0, 0, 0] : f32 from vector<1x1x1xf32>
      %197 = arith.mulf %182, %182 : vector<32x1xf32>
      %198 = vector.shape_cast %197 : vector<32x1xf32> to vector<1x32x1xf32>
      %cst_77 = arith.constant dense<0.000000e+00> : vector<1xf32>
      %199 = vector.multi_reduction <add>, %198, %cst_77 [1, 2] : vector<1x32x1xf32> to vector<1xf32>
      %200 = vector.shape_cast %199 : vector<1xf32> to vector<1x1x1xf32>
      %201 = vector.extract %200[0, 0, 0] : f32 from vector<1x1x1xf32>
      %202 = arith.mulf %183, %183 : vector<32x1xf32>
      %203 = vector.shape_cast %202 : vector<32x1xf32> to vector<1x32x1xf32>
      %cst_78 = arith.constant dense<0.000000e+00> : vector<1xf32>
      %204 = vector.multi_reduction <add>, %203, %cst_78 [1, 2] : vector<1x32x1xf32> to vector<1xf32>
      %205 = vector.shape_cast %204 : vector<1xf32> to vector<1x1x1xf32>
      %206 = vector.extract %205[0, 0, 0] : f32 from vector<1x1x1xf32>
      %207 = tpu.iota {dimensions = array<i32: 1>} : vector<1x8x128xi32>
      %c0_i32_79 = arith.constant 0 : i32
      %208 = vector.broadcast %c0_i32_79 : i32 to vector<1x8x128xi32>
      %209 = arith.cmpi eq, %207, %208 : vector<1x8x128xi32>
      %cst_80 = arith.constant 0.000000e+00 : f32
      %210 = vector.broadcast %187 : f32 to vector<1x8x128xf32>
      %211 = vector.broadcast %cst_80 : f32 to vector<1x8x128xf32>
      %212 = arith.select %209, %210, %211 : vector<1x8x128xi1>, vector<1x8x128xf32>
      %c1_i32 = arith.constant 1 : i32
      %213 = vector.broadcast %c1_i32 : i32 to vector<1x8x128xi32>
      %214 = arith.cmpi eq, %207, %213 : vector<1x8x128xi32>
      %cst_81 = arith.constant 0.000000e+00 : f32
      %215 = vector.broadcast %191 : f32 to vector<1x8x128xf32>
      %216 = vector.broadcast %cst_81 : f32 to vector<1x8x128xf32>
      %217 = arith.select %214, %215, %216 : vector<1x8x128xi1>, vector<1x8x128xf32>
      %218 = arith.addf %212, %217 : vector<1x8x128xf32>
      %c2_i32 = arith.constant 2 : i32
      %219 = vector.broadcast %c2_i32 : i32 to vector<1x8x128xi32>
      %220 = arith.cmpi eq, %207, %219 : vector<1x8x128xi32>
      %cst_82 = arith.constant 0.000000e+00 : f32
      %221 = vector.broadcast %196 : f32 to vector<1x8x128xf32>
      %222 = vector.broadcast %cst_82 : f32 to vector<1x8x128xf32>
      %223 = arith.select %220, %221, %222 : vector<1x8x128xi1>, vector<1x8x128xf32>
      %224 = arith.addf %218, %223 : vector<1x8x128xf32>
      %c3_i32 = arith.constant 3 : i32
      %225 = vector.broadcast %c3_i32 : i32 to vector<1x8x128xi32>
      %226 = arith.cmpi eq, %207, %225 : vector<1x8x128xi32>
      %cst_83 = arith.constant 0.000000e+00 : f32
      %227 = vector.broadcast %201 : f32 to vector<1x8x128xf32>
      %228 = vector.broadcast %cst_83 : f32 to vector<1x8x128xf32>
      %229 = arith.select %226, %227, %228 : vector<1x8x128xi1>, vector<1x8x128xf32>
      %230 = arith.addf %224, %229 : vector<1x8x128xf32>
      %c4_i32 = arith.constant 4 : i32
      %231 = vector.broadcast %c4_i32 : i32 to vector<1x8x128xi32>
      %232 = arith.cmpi eq, %207, %231 : vector<1x8x128xi32>
      %cst_84 = arith.constant 0.000000e+00 : f32
      %233 = vector.broadcast %206 : f32 to vector<1x8x128xf32>
      %234 = vector.broadcast %cst_84 : f32 to vector<1x8x128xf32>
      %235 = arith.select %232, %233, %234 : vector<1x8x128xi1>, vector<1x8x128xf32>
      %236 = arith.addf %230, %235 : vector<1x8x128xf32>
      %c0_85 = arith.constant 0 : index
      %c0_86 = arith.constant 0 : index
      %c0_87 = arith.constant 0 : index
      %237 = vector.load %arg6[%c0_85, %c0_86, %c0_87] : memref<1x8x128xf32, #tpu.memory_space<vmem>>, vector<1x8x128xf32>
      tpu.vector_store %arg6[%c0_85, %c0_86, %c0_87], %236 {strides = array<i32>} : memref<1x8x128xf32, #tpu.memory_space<vmem>>, vector<1x8x128xf32>,
    } else {
    }
    return
  }
  func.func @transform_0(%arg0: i32, %arg1: i32) -> i32 {
    %c0_i32 = arith.constant 0 : i32
    %c0_i32_0 = arith.constant 0 : i32
    return %c0_i32 : i32
  }
  func.func @transform_1(%arg0: i32, %arg1: i32) -> (i32, i32) {
    %c0_i32 = arith.constant 0 : i32
    return %arg0, %arg1 : i32, i32
  }
  func.func @transform_2(%arg0: i32, %arg1: i32) -> (i32, i32) {
    %c0_i32 = arith.constant 0 : i32
    %c0_i32_0 = arith.constant 0 : i32
    return %arg0, %c0_i32 : i32, i32
  }
  func.func @transform_3(%arg0: i32, %arg1: i32) -> (i32, i32) {
    %c0_i32 = arith.constant 0 : i32
    %c0_i32_0 = arith.constant 0 : i32
    return %arg1, %c0_i32 : i32, i32
  }
  func.func @transform_4(%arg0: i32, %arg1: i32) -> (i32, i32, i32) {
    %c0_i32 = arith.constant 0 : i32
    %c0_i32_0 = arith.constant 0 : i32
    %c0_i32_1 = arith.constant 0 : i32
    return %arg0, %c0_i32, %c0_i32_0 : i32, i32, i32
  }
}

</mosaic_0001>

<bundles_post_ra>
// kernel: pearson_r_loss.1
= control target key start
LH: loop header
LB: loop body
LE: loop exit
PB: predicated region body
PF: predicated region fallthrough
CT: control target
= control target key end

     0   :  { %v1603_v0 = vmov 0   ;;  %vm1099_vm12 = vcmask 7168   ;;  %s2230_s3 = inlined_call_operand.vmem [shape: f32[512,1], index: 3, kind: input, shape index: {}]   ;;  %s2231_s1 = inlined_call_operand.vmem [shape: f32[32,512], index: 1, kind: input, shape index: {}]   ;;  %s2232_s0 = inlined_call_operand.<no memory space> [shape: f32[1], index: 0, kind: input, shape index: {}]   ;;  %s2233_s2 = inlined_call_operand.vmem [shape: f32[32,1], index: 2, kind: input, shape index: {}]   ;;  %s2234_s4 = inlined_call_operand.vmem [shape: f32[1,8,128], index: 4, kind: output, shape index: {}]  }
   0x1   :  { %1418 = vset.pattern.permute.xlu1 %v1603_v0  ;;  %1407 = vset.pattern.permute.xlu0 %v1603_v0  ;;  %v58_v1 = vld [vmem:[%s2230_s3 + $0x80] sm:$0xff]  ;;  %v59_v2 = vld [vmem:[%s2230_s3 + $0x88] sm:$0xff]  ;;  %v60_v13 = vld [vmem:[%s2230_s3 + $0x90] sm:$0xff] }
   0x2   :  { %v42_v3 = vld [vmem:[%s2230_s3] sm:$0xff]  ;;  %v1408_v4 = vpack.i.bf16 %v59_v2, %v58_v1  ;;  %v43_v5 = vld [vmem:[%s2230_s3 + $0x8] sm:$0xff]  ;;  %v61_v14 = vld [vmem:[%s2230_s3 + $0x98] sm:$0xff] }
   0x3   :  { %v90_v6 = vld [vmem:[%s2230_s3 + $0x180] sm:$0xff]  ;;  %v91_v7 = vld [vmem:[%s2230_s3 + $0x188] sm:$0xff]  ;;  %v1419_v8 = vpack.i.bf16 %v43_v5, %v42_v3  ;;  %v92_v15 = vld [vmem:[%s2230_s3 + $0x190] sm:$0xff]  ;;  %v1429_v17 = vpack.i.bf16 %v61_v14, %v60_v13 }
   0x4   :  { %v74_v9 = vld [vmem:[%s2230_s3 + $0x100] sm:$0xff]  ;;  %v75_v10 = vld [vmem:[%s2230_s3 + $0x108] sm:$0xff]  ;;  %1409 = vperm.xlu0 %1407, %v1408_v4   ;;  %v1413_v11 = vpack.i.bf16 %v91_v7, %v90_v6  ;;  %v93_v16 = vld [vmem:[%s2230_s3 + $0x198] sm:$0xff] }
   0x5   :  { %1420 = vperm.xlu1 %1418, %v1419_v8   ;;  %v1424_v12 = vpack.i.bf16 %v75_v10, %v74_v9  ;;  %v1434_v18 = vpack.i.bf16 %v93_v16, %v92_v15  ;;  %v44_v19 = vld [vmem:[%s2230_s3 + $0x10] sm:$0xff]  ;;  %v45_v20 = vld [vmem:[%s2230_s3 + $0x18] sm:$0xff]  ;;  %v62_v25 = vld [vmem:[%s2230_s3 + $0xa0] sm:$0xff] }
   0x6   :  { %v76_v21 = vld [vmem:[%s2230_s3 + $0x110] sm:$0xff]  ;;  %v77_v22 = vld [vmem:[%s2230_s3 + $0x118] sm:$0xff]  ;;  %v1439_v23 = vpack.i.bf16 %v45_v20, %v44_v19  ;;  %v63_v26 = vld [vmem:[%s2230_s3 + $0xa8] sm:$0xff] }
   0x7   :  { %v1444_v24 = vpack.i.bf16 %v77_v22, %v76_v21  ;;  %v94_v27 = vld [vmem:[%s2230_s3 + $0x1a0] sm:$0xff]  ;;  %v95_v28 = vld [vmem:[%s2230_s3 + $0x1a8] sm:$0xff]  ;;  %v1449_v29 = vpack.i.bf16 %v63_v26, %v62_v25  ;;  %v64_v37 = vld [vmem:[%s2230_s3 + $0xb0] sm:$0xff] }
   0x8   :  { %1414 = vperm.xlu0 %1407, %v1413_v11   ;;  %v1454_v30 = vpack.i.bf16 %v95_v28, %v94_v27  ;;  %v46_v31 = vld [vmem:[%s2230_s3 + $0x20] sm:$0xff]  ;;  %v47_v32 = vld [vmem:[%s2230_s3 + $0x28] sm:$0xff]  ;;  %v65_v38 = vld [vmem:[%s2230_s3 + $0xb8] sm:$0xff] }
   0x9   :  { %1425 = vperm.xlu1 %1418, %v1424_v12   ;;  %v78_v33 = vld [vmem:[%s2230_s3 + $0x120] sm:$0xff]  ;;  %v79_v34 = vld [vmem:[%s2230_s3 + $0x128] sm:$0xff]  ;;  %v1459_v35 = vpack.i.bf16 %v47_v32, %v46_v31  ;;  %v96_v39 = vld [vmem:[%s2230_s3 + $0x1b0] sm:$0xff]  ;;  %v1469_v41 = vpack.i.bf16 %v65_v38, %v64_v37 }
   0xa   :  { %v1464_v36 = vpack.i.bf16 %v79_v34, %v78_v33  ;;  %v97_v40 = vld [vmem:[%s2230_s3 + $0x1b8] sm:$0xff]  ;;  %v48_v43 = vld [vmem:[%s2230_s3 + $0x30] sm:$0xff]  ;;  %v66_v49 = vld [vmem:[%s2230_s3 + $0xc0] sm:$0xff] }
   0xb   :  { %v1474_v42 = vpack.i.bf16 %v97_v40, %v96_v39  ;;  %v49_v44 = vld [vmem:[%s2230_s3 + $0x38] sm:$0xff]  ;;  %v80_v45 = vld [vmem:[%s2230_s3 + $0x130] sm:$0xff]  ;;  %v67_v50 = vld [vmem:[%s2230_s3 + $0xc8] sm:$0xff] }
   0xc   :  { %1430 = vperm.xlu0 %1407, %v1429_v17   ;;  %v81_v46 = vld [vmem:[%s2230_s3 + $0x138] sm:$0xff]  ;;  %v1479_v47 = vpack.i.bf16 %v49_v44, %v48_v43  ;;  %v98_v51 = vld [vmem:[%s2230_s3 + $0x1c0] sm:$0xff]  ;;  %v99_v52 = vld [vmem:[%s2230_s3 + $0x1c8] sm:$0xff]  ;;  %v1489_v53 = vpack.i.bf16 %v67_v50, %v66_v49 }
   0xd   :  { %1435 = vperm.xlu1 %1418, %v1434_v18   ;;  %v1484_v48 = vpack.i.bf16 %v81_v46, %v80_v45  ;;  %v1494_v54 = vpack.i.bf16 %v99_v52, %v98_v51  ;;  %v50_v55 = vld [vmem:[%s2230_s3 + $0x40] sm:$0xff]  ;;  %v51_v56 = vld [vmem:[%s2230_s3 + $0x48] sm:$0xff]  ;;  %v68_v61 = vld [vmem:[%s2230_s3 + $0xd0] sm:$0xff] }
   0xe   :  { %v82_v57 = vld [vmem:[%s2230_s3 + $0x140] sm:$0xff]  ;;  %v83_v58 = vld [vmem:[%s2230_s3 + $0x148] sm:$0xff]  ;;  %v1499_v59 = vpack.i.bf16 %v51_v56, %v50_v55  ;;  %v69_v62 = vld [vmem:[%s2230_s3 + $0xd8] sm:$0xff] }
   0xf   :  { %v1504_v60 = vpack.i.bf16 %v83_v58, %v82_v57  ;;  %v100_v63 = vld [vmem:[%s2230_s3 + $0x1d0] sm:$0xff]  ;;  %v101_v0 = vld [vmem:[%s2230_s3 + $0x1d8] sm:$0xff]  ;;  %v1509_v1 = vpack.i.bf16 %v69_v62, %v68_v61  ;;  %v70_v9 = vld [vmem:[%s2230_s3 + $0xe0] sm:$0xff] }
  0x10   :  { %1440 = vperm.xlu0 %1407, %v1439_v23   ;;  %v1514_v2 = vpack.i.bf16 %v101_v0, %v100_v63  ;;  %v52_v3 = vld [vmem:[%s2230_s3 + $0x50] sm:$0xff]  ;;  %v53_v4 = vld [vmem:[%s2230_s3 + $0x58] sm:$0xff]  ;;  %v71_v10 = vld [vmem:[%s2230_s3 + $0xe8] sm:$0xff] }
  0x11   :  { %1445 = vperm.xlu1 %1418, %v1444_v24   ;;  %v84_v5 = vld [vmem:[%s2230_s3 + $0x150] sm:$0xff]  ;;  %v85_v6 = vld [vmem:[%s2230_s3 + $0x158] sm:$0xff]  ;;  %v1519_v7 = vpack.i.bf16 %v53_v4, %v52_v3  ;;  %v102_v11 = vld [vmem:[%s2230_s3 + $0x1e0] sm:$0xff]  ;;  %v1529_v13 = vpack.i.bf16 %v71_v10, %v70_v9 }
  0x12   :  { %v1524_v8 = vpack.i.bf16 %v85_v6, %v84_v5  ;;  %v103_v12 = vld [vmem:[%s2230_s3 + $0x1e8] sm:$0xff]  ;;  %v54_v15 = vld [vmem:[%s2230_s3 + $0x60] sm:$0xff]  ;;  %v72_v21 = vld [vmem:[%s2230_s3 + $0xf0] sm:$0xff] }
  0x13   :  { %v1534_v14 = vpack.i.bf16 %v103_v12, %v102_v11  ;;  %v55_v16 = vld [vmem:[%s2230_s3 + $0x68] sm:$0xff]  ;;  %v86_v17 = vld [vmem:[%s2230_s3 + $0x160] sm:$0xff]  ;;  %v73_v22 = vld [vmem:[%s2230_s3 + $0xf8] sm:$0xff] }
  0x14   :  { %1450 = vperm.xlu0 %1407, %v1449_v29   ;;  %v87_v18 = vld [vmem:[%s2230_s3 + $0x168] sm:$0xff]  ;;  %v1539_v19 = vpack.i.bf16 %v55_v16, %v54_v15  ;;  %v104_v23 = vld [vmem:[%s2230_s3 + $0x1f0] sm:$0xff]  ;;  %v105_v24 = vld [vmem:[%s2230_s3 + $0x1f8] sm:$0xff]  ;;  %v1549_v25 = vpack.i.bf16 %v73_v22, %v72_v21 }
  0x15   :  { %1455 = vperm.xlu1 %1418, %v1454_v30   ;;  %v1544_v20 = vpack.i.bf16 %v87_v18, %v86_v17  ;;  %v1554_v26 = vpack.i.bf16 %v105_v24, %v104_v23  ;;  %v56_v27 = vld [vmem:[%s2230_s3 + $0x70] sm:$0xff]  ;;  %v57_v28 = vld [vmem:[%s2230_s3 + $0x78] sm:$0xff]  ;;  %v27_v33 = vld [vmem:[%s2231_s1 + $0x8] sm:$0xff] }
  0x16   :  { %v88_v29 = vld [vmem:[%s2230_s3 + $0x170] sm:$0xff]  ;;  %v89_v30 = vld [vmem:[%s2230_s3 + $0x178] sm:$0xff]  ;;  %v1559_v31 = vpack.i.bf16 %v57_v28, %v56_v27  ;;  %494 = vmatprep.mubr.f32.mxu0 %v27_v33 }
  0x17   :  { %v1564_v32 = vpack.i.bf16 %v89_v30, %v88_v29  ;;  %v29_v34 = vld [vmem:[%s2231_s1 + $0x18] sm:$0xff] }
  0x18   :  { %1460 = vperm.xlu0 %1407, %v1459_v35   ;;  %579 = vmatprep.mubr.f32.mxu1 %v29_v34  ;;  %v612_v35 = vstv %s2232_s0 }
  0x19   :  { %1465 = vperm.xlu1 %1418, %v1464_v36   ;;  %1569 = vrcp.f32 %v612_v35 }
  0x1c   :  { %1470 = vperm.xlu0 %1407, %v1469_v41  }
  0x1d   :  { %1475 = vperm.xlu1 %1418, %v1474_v42  }
  0x20   :  { %1480 = vperm.xlu0 %1407, %v1479_v47  }
  0x21   :  { %1485 = vperm.xlu1 %1418, %v1484_v48  }
  0x23   :  { %v1570_v36 = vpop.eup %1569 }
  0x24   :  { %1490 = vperm.xlu0 %1407, %v1489_v53   ;;  %1393 = vpush %v1570_v36 }
  0x25   :  { %1495 = vperm.xlu1 %1418, %v1494_v54  }
  0x28   :  { %1500 = vperm.xlu0 %1407, %v1499_v59  }
  0x29   :  { %1505 = vperm.xlu1 %1418, %v1504_v60  }
  0x2c   :  { %1510 = vperm.xlu0 %1407, %v1509_v1  }
  0x2d   :  { %1515 = vperm.xlu1 %1418, %v1514_v2  }
  0x30   :  { %1520 = vperm.xlu0 %1407, %v1519_v7  }
  0x31   :  { %1525 = vperm.xlu1 %1418, %v1524_v8  }
  0x34   :  { %1530 = vperm.xlu0 %1407, %v1529_v13  }
  0x35   :  { %1535 = vperm.xlu1 %1418, %v1534_v14  }
  0x38   :  { %1540 = vperm.xlu0 %1407, %v1539_v19  }
  0x39   :  { %1545 = vperm.xlu1 %1418, %v1544_v20  }
  0x3c   :  { %1550 = vperm.xlu0 %1407, %v1549_v25  }
  0x3d   :  { %1555 = vperm.xlu1 %1418, %v1554_v26  }
  0x40   :  { %1560 = vperm.xlu0 %1407, %v1559_v31  }
  0x41   :  { %1565 = vperm.xlu1 %1418, %v1564_v32  }
  0x83   :  { %v1410_v37 = vpop.permute.xlu0 %1409 }
  0x84   :  { %v1412_v38 = vunpack.i.h.bf16 %v1410_v37  ;;  %v1411_v39 = vunpack.i.l.bf16 %v1410_v37  ;;  %v1421_v40 = vpop.permute.xlu1 %1420 }
  0x85   :  { %v1423_v41 = vunpack.i.h.bf16 %v1421_v40  ;;  %v1422_v42 = vunpack.i.l.bf16 %v1421_v40 }
  0x86   :  { %v1329_v43 = vpack.c.bf16 %v1412_v38, %v1411_v39 }
  0x87   :  { %v1415_v44 = vpop.permute.xlu0 %1414  ;;  %v1331_v45 = vpack.c.bf16 %v1423_v41, %v1422_v42 }
  0x88   :  { %v1417_v46 = vunpack.i.h.bf16 %v1415_v44  ;;  %v1416_v47 = vunpack.i.l.bf16 %v1415_v44  ;;  %v1426_v48 = vpop.permute.xlu1 %1425  ;;  %1330 = vmatprep.subr.bf16.mxu0 %v1329_v43 }
  0x89   :  { %v1428_v49 = vunpack.i.h.bf16 %v1426_v48  ;;  %v1427_v50 = vunpack.i.l.bf16 %v1426_v48  ;;  %1332 = vmatpush3.bf16.msra.mxu0 %v1331_v45 }
  0x8a   :  { %v1361_v51 = vpack.c.bf16 %v1417_v46, %v1416_v47 }
  0x8b   :  { %v1431_v52 = vpop.permute.xlu0 %1430  ;;  %v1363_v53 = vpack.c.bf16 %v1428_v49, %v1427_v50 }
  0x8c   :  { %v1433_v54 = vunpack.i.h.bf16 %v1431_v52  ;;  %v1432_v55 = vunpack.i.l.bf16 %v1431_v52  ;;  %v1436_v56 = vpop.permute.xlu1 %1435  ;;  %1362 = vmatprep.subr.bf16.mxu1 %v1361_v51 }
  0x8d   :  { %v1438_v57 = vunpack.i.h.bf16 %v1436_v56  ;;  %v1437_v58 = vunpack.i.l.bf16 %v1436_v56  ;;  %1364 = vmatpush3.bf16.msra.mxu1 %v1363_v53 }
  0x8e   :  { %v1333_v59 = vpack.c.bf16 %v1433_v54, %v1432_v55 }
  0x8f   :  { %v1365_v60 = vpack.c.bf16 %v1438_v57, %v1437_v58  ;;  %v1441_v61 = vpop.permute.xlu0 %1440 }
  0x90   :  { %v1443_v62 = vunpack.i.h.bf16 %v1441_v61  ;;  %v1442_v63 = vunpack.i.l.bf16 %v1441_v61  ;;  %v1446_v0 = vpop.permute.xlu1 %1445  ;;  %1334 = vmatprep.subr.bf16.mxu0 %v1333_v59 }
  0x91   :  { %v1448_v1 = vunpack.i.h.bf16 %v1446_v0  ;;  %v1447_v2 = vunpack.i.l.bf16 %v1446_v0  ;;  %1366 = vmatprep.subr.bf16.mxu1 %v1365_v60 }
  0x92   :  { %v1335_v3 = vpack.c.bf16 %v1443_v62, %v1442_v63 }
  0x93   :  { %v1367_v4 = vpack.c.bf16 %v1448_v1, %v1447_v2  ;;  %v1451_v5 = vpop.permute.xlu0 %1450 }
  0x94   :  { %v1453_v6 = vunpack.i.h.bf16 %v1451_v5  ;;  %v1452_v7 = vunpack.i.l.bf16 %v1451_v5  ;;  %v1456_v8 = vpop.permute.xlu1 %1455  ;;  %1336 = vmatpush3.bf16.msra.mxu0 %v1335_v3 }
  0x95   :  { %v1458_v9 = vunpack.i.h.bf16 %v1456_v8  ;;  %v1457_v10 = vunpack.i.l.bf16 %v1456_v8  ;;  %1368 = vmatpush3.bf16.msra.mxu1 %v1367_v4 }
  0x96   :  { %v1337_v11 = vpack.c.bf16 %v1453_v6, %v1452_v7 }
  0x97   :  { %v1369_v12 = vpack.c.bf16 %v1458_v9, %v1457_v10  ;;  %v1461_v13 = vpop.permute.xlu0 %1460 }
  0x98   :  { %v1463_v14 = vunpack.i.h.bf16 %v1461_v13  ;;  %v1462_v15 = vunpack.i.l.bf16 %v1461_v13  ;;  %v1466_v16 = vpop.permute.xlu1 %1465  ;;  %1338 = vmatprep.subr.bf16.mxu0 %v1337_v11 }
  0x99   :  { %v1468_v17 = vunpack.i.h.bf16 %v1466_v16  ;;  %v1467_v18 = vunpack.i.l.bf16 %v1466_v16  ;;  %1370 = vmatprep.subr.bf16.mxu1 %v1369_v12 }
  0x9a   :  { %v1339_v19 = vpack.c.bf16 %v1463_v14, %v1462_v15 }
  0x9b   :  { %v1371_v20 = vpack.c.bf16 %v1468_v17, %v1467_v18  ;;  %v1471_v21 = vpop.permute.xlu0 %1470 }
  0x9c   :  { %v1473_v22 = vunpack.i.h.bf16 %v1471_v21  ;;  %v1472_v23 = vunpack.i.l.bf16 %v1471_v21  ;;  %v1476_v24 = vpop.permute.xlu1 %1475  ;;  %1340 = vmatpush3.bf16.msra.mxu0 %v1339_v19 }
  0x9d   :  { %v1478_v25 = vunpack.i.h.bf16 %v1476_v24  ;;  %v1477_v26 = vunpack.i.l.bf16 %v1476_v24  ;;  %1372 = vmatpush3.bf16.msra.mxu1 %v1371_v20 }
  0x9e   :  { %v1341_v27 = vpack.c.bf16 %v1473_v22, %v1472_v23 }
  0x9f   :  { %v1373_v28 = vpack.c.bf16 %v1478_v25, %v1477_v26  ;;  %v1481_v29 = vpop.permute.xlu0 %1480 }
  0xa0   :  { %v1483_v30 = vunpack.i.h.bf16 %v1481_v29  ;;  %v1482_v31 = vunpack.i.l.bf16 %v1481_v29  ;;  %v1486_v32 = vpop.permute.xlu1 %1485  ;;  %1342 = vmatprep.subr.bf16.mxu0 %v1341_v27 }
  0xa1   :  { %v1488_v33 = vunpack.i.h.bf16 %v1486_v32  ;;  %v1487_v34 = vunpack.i.l.bf16 %v1486_v32  ;;  %1374 = vmatprep.subr.bf16.mxu1 %v1373_v28 }
  0xa2   :  { %v1343_v35 = vpack.c.bf16 %v1483_v30, %v1482_v31 }
  0xa3   :  { %v1375_v36 = vpack.c.bf16 %v1488_v33, %v1487_v34  ;;  %v1491_v37 = vpop.permute.xlu0 %1490 }
  0xa4   :  { %v1493_v38 = vunpack.i.h.bf16 %v1491_v37  ;;  %v1492_v39 = vunpack.i.l.bf16 %v1491_v37  ;;  %v1496_v40 = vpop.permute.xlu1 %1495  ;;  %1344 = vmatpush3.bf16.msra.mxu0 %v1343_v35  ;;  %v26_v37 = vld [vmem:[%s2231_s1] sm:$0xff] }
  0xa5   :  { %v1498_v41 = vunpack.i.h.bf16 %v1496_v40  ;;  %v1497_v42 = vunpack.i.l.bf16 %v1496_v40  ;;  %1376 = vmatpush3.bf16.msra.mxu1 %v1375_v36  ;;  %v33_v40 = vld [vmem:[%s2231_s1 + $0x38] sm:$0xff] }
  0xa6   :  { %v1345_v43 = vpack.c.bf16 %v1493_v38, %v1492_v39  ;;  %v28_v38 = vld [vmem:[%s2231_s1 + $0x10] sm:$0xff]  ;;  %v31_v39 = vld [vmem:[%s2231_s1 + $0x28] sm:$0xff] }
  0xa7   :  { %v1377_v44 = vpack.c.bf16 %v1498_v41, %v1497_v42  ;;  %v1501_v45 = vpop.permute.xlu0 %1500  ;;  %v30_v41 = vld [vmem:[%s2231_s1 + $0x20] sm:$0xff]  ;;  %v32_v42 = vld [vmem:[%s2231_s1 + $0x30] sm:$0xff] }
  0xa8   :  { %v1503_v46 = vunpack.i.h.bf16 %v1501_v45  ;;  %v1502_v47 = vunpack.i.l.bf16 %v1501_v45  ;;  %v1506_v48 = vpop.permute.xlu1 %1505  ;;  %1346 = vmatprep.subr.bf16.mxu0 %v1345_v43  ;;  %v35_v43 = vld [vmem:[%s2231_s1 + $0x48] sm:$0xff]  ;;  %v34_v45 = vld [vmem:[%s2231_s1 + $0x40] sm:$0xff] }
  0xa9   :  { %v1508_v49 = vunpack.i.h.bf16 %v1506_v48  ;;  %v1507_v50 = vunpack.i.l.bf16 %v1506_v48  ;;  %1378 = vmatprep.subr.bf16.mxu1 %v1377_v44  ;;  %v37_v44 = vld [vmem:[%s2231_s1 + $0x58] sm:$0xff] }
  0xaa   :  { %v1347_v51 = vpack.c.bf16 %v1503_v46, %v1502_v47  ;;  %v36_v46 = vld [vmem:[%s2231_s1 + $0x50] sm:$0xff]  ;;  %v39_v47 = vld [vmem:[%s2231_s1 + $0x68] sm:$0xff]  ;;  %v41_v48 = vld [vmem:[%s2231_s1 + $0x78] sm:$0xff] }
  0xab   :  { %v1379_v52 = vpack.c.bf16 %v1508_v49, %v1507_v50  ;;  %v1511_v53 = vpop.permute.xlu0 %1510  ;;  %v38_v49 = vld [vmem:[%s2231_s1 + $0x60] sm:$0xff]  ;;  %v40_v50 = vld [vmem:[%s2231_s1 + $0x70] sm:$0xff] }
  0xac   :  { %v1513_v54 = vunpack.i.h.bf16 %v1511_v53  ;;  %v1512_v55 = vunpack.i.l.bf16 %v1511_v53  ;;  %v1516_v56 = vpop.permute.xlu1 %1515  ;;  %1348 = vmatpush3.bf16.msra.mxu0 %v1347_v51  ;;  %v624_v51 = vld [vmem:[%s2233_s2] sm:$0xff] }
  0xad   :  { %v1518_v57 = vunpack.i.h.bf16 %v1516_v56  ;;  %v1517_v58 = vunpack.i.l.bf16 %v1516_v56  ;;  %1380 = vmatpush3.bf16.msra.mxu1 %v1379_v52  ;;  %v848_v52 = vmax.f32 %v624_v51, 1e-06 }
  0xae   :  { %v1349_v59 = vpack.c.bf16 %v1513_v54, %v1512_v55  ;;  %v625_v54 = vld [vmem:[%s2233_s2 + $0x8] sm:$0xff] }
  0xaf   :  { %v1381_v60 = vpack.c.bf16 %v1518_v57, %v1517_v58  ;;  %v1521_v61 = vpop.permute.xlu0 %1520  ;;  %v852_v53 = vmin.f32 %v848_v52, 0.999999  ;;  %v849_v55 = vmax.f32 %v625_v54, 1e-06 }
  0xb0   :  { %v1523_v62 = vunpack.i.h.bf16 %v1521_v61  ;;  %v1522_v63 = vunpack.i.l.bf16 %v1521_v61  ;;  %v1526_v0 = vpop.permute.xlu1 %1525  ;;  %1350 = vmatprep.subr.bf16.mxu0 %v1349_v59  ;;  %v626_v59 = vld [vmem:[%s2233_s2 + $0x10] sm:$0xff] }
  0xb1   :  { %v1528_v1 = vunpack.i.h.bf16 %v1526_v0  ;;  %v1527_v2 = vunpack.i.l.bf16 %v1526_v0  ;;  %1382 = vmatprep.subr.bf16.mxu1 %v1381_v60  ;;  %v856_v56 = vmul.f32 2.0, %v852_v53  ;;  %v853_v57 = vmin.f32 %v849_v55, 0.999999  ;;  %v627_v0 = vld [vmem:[%s2233_s2 + $0x18] sm:$0xff]  ;;  %s1394_s2 = spop %1393 }
  0xb2   :  { %v1351_v3 = vpack.c.bf16 %v1523_v62, %v1522_v63  ;;  %v850_v60 = vmax.f32 %v626_v59, 1e-06 }
  0xb3   :  { %v1383_v4 = vpack.c.bf16 %v1528_v1, %v1527_v2  ;;  %v1531_v5 = vpop.permute.xlu0 %1530  ;;  %v1879_v58 = vadd.f32 -1.0, %v856_v56  ;;  %v857_v61 = vmul.f32 2.0, %v853_v57  ;;  %v851_v1 = vmax.f32 %v627_v0, 1e-06 }
  0xb4   :  { %v1533_v6 = vunpack.i.h.bf16 %v1531_v5  ;;  %v1532_v7 = vunpack.i.l.bf16 %v1531_v5  ;;  %v1536_v8 = vpop.permute.xlu1 %1535  ;;  %1352 = vmatpush3.bf16.msra.mxu0 %v1351_v3  ;;  %v854_v2 = vmin.f32 %v850_v60, 0.999999 }
  0xb5   :  { %v1538_v9 = vunpack.i.h.bf16 %v1536_v8  ;;  %v1537_v10 = vunpack.i.l.bf16 %v1536_v8  ;;  %1384 = vmatpush3.bf16.msra.mxu1 %v1383_v4  ;;  %v864_v62 = vsub.f32 1.0, %v1879_v58  ;;  %v868_v63 = vadd.f32 1.0, %v1879_v58 }
  0xb6   :  { %v1353_v11 = vpack.c.bf16 %v1533_v6, %v1532_v7  ;;  %v1889_v3 = vadd.f32 -1.0, %v857_v61  ;;  %v855_v5 = vmin.f32 %v851_v1, 0.999999  ;;  %v858_v6 = vmul.f32 2.0, %v854_v2 }
  0xb7   :  { %v1385_v12 = vpack.c.bf16 %v1538_v9, %v1537_v10  ;;  %v1541_v13 = vpop.permute.xlu0 %1540  ;;  %v872_v4 = vmul.f32 %v868_v63, %v864_v62 }
  0xb8   :  { %v1543_v14 = vunpack.i.h.bf16 %v1541_v13  ;;  %v1542_v15 = vunpack.i.l.bf16 %v1541_v13  ;;  %v1546_v16 = vpop.permute.xlu1 %1545  ;;  %1354 = vmatprep.subr.bf16.mxu0 %v1353_v11  ;;  %v865_v7 = vsub.f32 1.0, %v1889_v3  ;;  %v869_v8 = vadd.f32 1.0, %v1889_v3 }
  0xb9   :  { %v1548_v17 = vunpack.i.h.bf16 %v1546_v16  ;;  %v1547_v18 = vunpack.i.l.bf16 %v1546_v16  ;;  %1386 = vmatprep.subr.bf16.mxu1 %v1385_v12  ;;  %1571 = vlog2.f32 %v872_v4  ;;  %v859_v9 = vmul.f32 2.0, %v855_v5 }
  0xba   :  { %v1355_v19 = vpack.c.bf16 %v1543_v14, %v1542_v15  ;;  %v1893_v10 = vadd.f32 -1.0, %v858_v6  ;;  %v873_v11 = vmul.f32 %v869_v8, %v865_v7 }
  0xbb   :  { %v1387_v20 = vpack.c.bf16 %v1548_v17, %v1547_v18  ;;  %v1551_v21 = vpop.permute.xlu0 %1550  ;;  %v1895_v12 = vadd.f32 -1.0, %v859_v9 }
  0xbc   :  { %v1553_v22 = vunpack.i.h.bf16 %v1551_v21  ;;  %v1552_v23 = vunpack.i.l.bf16 %v1551_v21  ;;  %v1556_v24 = vpop.permute.xlu1 %1555  ;;  %1356 = vmatpush3.bf16.msra.mxu0 %v1355_v19  ;;  %v866_v13 = vsub.f32 1.0, %v1893_v10  ;;  %v870_v14 = vadd.f32 1.0, %v1893_v10 }
  0xbd   :  { %v1558_v25 = vunpack.i.h.bf16 %v1556_v24  ;;  %v1557_v26 = vunpack.i.l.bf16 %v1556_v24  ;;  %1388 = vmatpush3.bf16.msra.mxu1 %v1387_v20  ;;  %1573 = vlog2.f32 %v873_v11  ;;  %v867_v15 = vsub.f32 1.0, %v1895_v12 }
  0xbe   :  { %v1357_v27 = vpack.c.bf16 %v1553_v22, %v1552_v23  ;;  %v871_v16 = vadd.f32 1.0, %v1895_v12  ;;  %v874_v17 = vmul.f32 %v870_v14, %v866_v13 }
  0xbf   :  { %v1389_v28 = vpack.c.bf16 %v1558_v25, %v1557_v26  ;;  %v1561_v29 = vpop.permute.xlu0 %1560 }
  0xc0   :  { %v1563_v30 = vunpack.i.h.bf16 %v1561_v29  ;;  %v1562_v31 = vunpack.i.l.bf16 %v1561_v29  ;;  %v1566_v32 = vpop.permute.xlu1 %1565  ;;  %1358 = vmatprep.subr.bf16.mxu0 %v1357_v27  ;;  %v875_v18 = vmul.f32 %v871_v16, %v867_v15  ;;  %1575 = vlog2.f32 %v874_v17 }
  0xc1   :  { %v1568_v33 = vunpack.i.h.bf16 %v1566_v32  ;;  %v1567_v34 = vunpack.i.l.bf16 %v1566_v32  ;;  %1390 = vmatprep.subr.bf16.mxu1 %v1389_v28 }
  0xc2   :  { %v1359_v35 = vpack.c.bf16 %v1563_v30, %v1562_v31  ;;  %1577 = vlog2.f32 %v875_v18 }
  0xc3   :  { %v1391_v36 = vpack.c.bf16 %v1568_v33, %v1567_v34  ;;  %v1572_v19 = vpop.eup %1571 }
  0xc4   :  { %1360 = vmatpush3.bf16.msra.mxu0 %v1359_v35  ;;  %v877_v20 = vmul.f32 0.6931472, %v1572_v19 }
  0xc5   :  { %1392 = vmatpush3.bf16.msra.mxu1 %v1391_v36 }
  0xc6   :  { %v1901_v22 = vsub.f32 0.0, %v877_v20 }
  0xc7   :  { %495 = vmatmul.mubr.f32.vlgmr.msra.gmra.mrb[0].mxu0 %v26_v37  ;;  %v1574_v21 = vpop.eup %1573 }
  0xc8   :  { %580 = vmatmul.mubr.f32.vlgmr.msra.gmra.mrb[0].mxu1 %v28_v38  ;;  %499 = vmatprep.mubr.f32.mxu0 %v31_v39  ;;  %v879_v23 = vmul.f32 0.6931472, %v1574_v21  ;;  %1579 = vrsqrt.f32 %v1901_v22  ;;  %vm958_vm0 = vcmp.eq.f32.partialorder %v1901_v22, inf  ;;  %v961_v33 = vand.u32 2147483648, %v1901_v22 }
  0xc9   :  { %584 = vmatprep.mubr.f32.mxu1 %v33_v40  ;;  %vm960_vm1 = vcmp.eq.f32.partialorder %v1901_v22, 0.0  ;;  %v1919_v36 = vadd.f32 -2.5, %v1901_v22  ;;  %vm1052_vm8 = vcmp.lt.f32.partialorder %v1901_v22, 5.0 }
  0xca   :  { %v1904_v24 = vsub.f32 0.0, %v879_v23  ;;  %v1576_v25 = vpop.eup %1575 }
  0xcb   :  { %500 = vmatmul.mubr.f32.gmra.mrb[2].mxu0 %v30_v41  ;;  %v881_v26 = vmul.f32 0.6931472, %v1576_v25  ;;  %v892_v41 = vmul.f32 2.8102264e-08, %v1919_v36 }
  0xcc   :  { %585 = vmatmul.mubr.f32.gmra.mrb[2].mxu1 %v32_v42  ;;  %504 = vmatprep.mubr.f32.mxu0 %v35_v43  ;;  %1581 = vrsqrt.f32 %v1904_v24  ;;  %v1578_v27 = vpop.eup %1577  ;;  %vm965_vm2 = vcmp.eq.f32.partialorder %v1904_v24, inf  ;;  %v968_v39 = vand.u32 2147483648, %v1904_v24  ;;  %vm967_vm3 = vcmp.eq.f32.partialorder %v1904_v24, 0.0 }
  0xcd   :  { %589 = vmatprep.mubr.f32.mxu1 %v37_v44  ;;  %v883_v28 = vmul.f32 0.6931472, %v1578_v27  ;;  %v1907_v29 = vsub.f32 0.0, %v881_v26  ;;  %vm1053_vm9 = vcmp.lt.f32.partialorder %v1904_v24, 5.0 }
  0xcf   :  { %505 = vmatmul.mubr.f32.gmra.mrb[4].mxu0 %v34_v45  ;;  %v1909_v30 = vsub.f32 0.0, %v883_v28  ;;  %1583 = vrsqrt.f32 %v1907_v29  ;;  %vm972_vm4 = vcmp.eq.f32.partialorder %v1907_v29, inf  ;;  %vm974_vm5 = vcmp.eq.f32.partialorder %v1907_v29, 0.0 }
  0xd0   :  { %590 = vmatmul.mubr.f32.gmra.mrb[4].mxu1 %v36_v46  ;;  %509 = vmatprep.mubr.f32.mxu0 %v39_v47  ;;  %v1931_v46 = vadd.f32 -2.5, %v1904_v24  ;;  %v896_v47 = vadd.f32 3.4327394e-07, %v892_v41  ;;  %v1946_v60 = vadd.f32 -2.5, %v1907_v29  ;;  %vm1054_vm10 = vcmp.lt.f32.partialorder %v1907_v29, 5.0 }
  0xd1   :  { %594 = vmatprep.mubr.f32.mxu1 %v41_v48  ;;  %1585 = vrsqrt.f32 %v1909_v30  ;;  %vm979_vm6 = vcmp.eq.f32.partialorder %v1909_v30, inf  ;;  %v982_v59 = vand.u32 2147483648, %v1909_v30  ;;  %vm981_vm7 = vcmp.eq.f32.partialorder %v1909_v30, 0.0 }
  0xd2   :  { %v1580_v31 = vpop.eup %1579  ;;  %v893_v53 = vmul.f32 2.8102264e-08, %v1931_v46  ;;  %v900_v54 = vmul.f32 %v1919_v36, %v896_v47  ;;  %v1955_v4 = vadd.f32 -2.5, %v1909_v30  ;;  %v894_v5 = vmul.f32 2.8102264e-08, %v1946_v60 }
  0xd3   :  { %510 = vmatmul.mubr.f32.gmra.mrb[6].mxu0 %v38_v49  ;;  %v957_v32 = vmul.f32 %v1580_v31, %v1901_v22  ;;  %vm1055_vm11 = vcmp.lt.f32.partialorder %v1909_v30, 5.0 }
  0xd4   :  { %595 = vmatmul.mubr.f32.gmra.mrb[6].mxu1 %v40_v50  ;;  %v975_v50 = vand.u32 2147483648, %v1907_v29  ;;  %v897_v61 = vadd.f32 3.4327394e-07, %v893_v53  ;;  %v904_v62 = vadd.f32 -3.5233877e-06, %v900_v54 }
  0xd5   :  { %v959_v35 = vsel %vm958_vm0, %v1901_v22, %v957_v32  ;;  %v895_v14 = vmul.f32 2.8102264e-08, %v1955_v4  ;;  %v898_v15 = vadd.f32 3.4327394e-07, %v894_v5 }
  0xd6   :  { %v1582_v34 = vpop.eup %1581  ;;  %v962_v37 = vsel %vm960_vm1, %v961_v33, %v959_v35  ;;  %v901_v6 = vmul.f32 %v1931_v46, %v897_v61  ;;  %v908_v7 = vmul.f32 %v1919_v36, %v904_v62 }
  0xd7   :  { %v964_v38 = vmul.f32 %v1582_v34, %v1904_v24  ;;  %v1924_v40 = vadd.f32 -3.0, %v962_v37  ;;  %v899_v21 = vadd.f32 3.4327394e-07, %v895_v14  ;;  %v902_v23 = vmul.f32 %v1946_v60, %v898_v15 }
  0xd8   :  { %v905_v16 = vadd.f32 -3.5233877e-06, %v901_v6  ;;  %v912_v17 = vadd.f32 -4.3915065e-06, %v908_v7 }
  0xd9   :  { %v966_v42 = vsel %vm965_vm2, %v1904_v24, %v964_v38  ;;  %v1584_v43 = vpop.eup %1583  ;;  %v988_v45 = vmul.f32 -0.00020021426, %v1924_v40  ;;  %v903_v33 = vmul.f32 %v1955_v4, %v899_v21  ;;  %v906_v34 = vadd.f32 -3.5233877e-06, %v902_v23 }
  0xda   :  { %v969_v44 = vsel %vm967_vm3, %v968_v39, %v966_v42  ;;  %v971_v48 = vmul.f32 %v1584_v43, %v1907_v29  ;;  %v909_v25 = vmul.f32 %v1931_v46, %v905_v16  ;;  %v916_v27 = vmul.f32 %v1919_v36, %v912_v17 }
  0xdb   :  { %v1586_v49 = vpop.eup %1585  ;;  %v1936_v51 = vadd.f32 -3.0, %v969_v44  ;;  %v992_v52 = vadd.f32 0.00010095056, %v988_v45  ;;  %v907_v43 = vadd.f32 -3.5233877e-06, %v903_v33  ;;  %v910_v44 = vmul.f32 %v1946_v60, %v906_v34 }
  0xdc   :  { %v973_v55 = vsel %vm972_vm4, %v1907_v29, %v971_v48  ;;  %v978_v57 = vmul.f32 %v1586_v49, %v1909_v30  ;;  %v913_v35 = vadd.f32 -4.3915065e-06, %v909_v25  ;;  %v920_v38 = vadd.f32 0.00021858087, %v916_v27 }
  0xdd   :  { %v976_v56 = vsel %vm974_vm5, %v975_v50, %v973_v55  ;;  %v989_v1 = vmul.f32 -0.00020021426, %v1936_v51  ;;  %v996_v2 = vmul.f32 %v1924_v40, %v992_v52  ;;  %v911_v53 = vmul.f32 %v1955_v4, %v907_v43 }
  0xde   :  { %v980_v63 = vsel %vm979_vm6, %v1909_v30, %v978_v57  ;;  %v1950_v0 = vadd.f32 -3.0, %v976_v56  ;;  %v917_v45 = vmul.f32 %v1931_v46, %v913_v35  ;;  %v924_v48 = vmul.f32 %v1919_v36, %v920_v38 }
  0xdf   :  { %v983_v8 = vsel %vm981_vm7, %v982_v59, %v980_v63  ;;  %v993_v11 = vadd.f32 0.00010095056, %v989_v1  ;;  %v1000_v13 = vadd.f32 0.0013493432, %v996_v2  ;;  %v914_v54 = vadd.f32 -4.3915065e-06, %v910_v44 }
  0xe0   :  { %v990_v9 = vmul.f32 -0.00020021426, %v1950_v0  ;;  %v1962_v18 = vadd.f32 -3.0, %v983_v8  ;;  %v921_v55 = vadd.f32 0.00021858087, %v917_v45 }
  0xe1   :  { %v997_v20 = vmul.f32 %v1936_v51, %v993_v11  ;;  %v1004_v26 = vmul.f32 %v1924_v40, %v1000_v13  ;;  %v928_v57 = vadd.f32 -0.001253725, %v924_v48  ;;  %v915_v63 = vadd.f32 -4.3915065e-06, %v911_v53 }
  0xe2   :  { %v994_v19 = vadd.f32 0.00010095056, %v990_v9  ;;  %v991_v28 = vmul.f32 -0.00020021426, %v1962_v18  ;;  %v918_v1 = vmul.f32 %v1946_v60, %v914_v54  ;;  %v925_v2 = vmul.f32 %v1931_v46, %v921_v55 }
  0xe3   :  { %v1001_v32 = vadd.f32 0.0013493432, %v997_v20  ;;  %v1008_v37 = vadd.f32 -0.0036734284, %v1004_v26  ;;  %v932_v6 = vmul.f32 %v1919_v36, %v928_v57  ;;  %v919_v11 = vmul.f32 %v1955_v4, %v915_v63 }
  0xe4   :  { %v998_v31 = vmul.f32 %v1950_v0, %v994_v19  ;;  %v995_v39 = vadd.f32 0.00010095056, %v991_v28  ;;  %v922_v13 = vadd.f32 0.00021858087, %v918_v1  ;;  %v929_v14 = vadd.f32 -0.001253725, %v925_v2 }
  0xe5   :  { %v1005_v42 = vmul.f32 %v1936_v51, %v1001_v32  ;;  %v1012_v47 = vmul.f32 %v1924_v40, %v1008_v37  ;;  %v936_v16 = vadd.f32 -0.0041776816, %v932_v6  ;;  %v923_v21 = vadd.f32 0.00021858087, %v919_v11 }
  0xe6   :  { %v1002_v41 = vadd.f32 0.0013493432, %v998_v31  ;;  %v999_v49 = vmul.f32 %v1962_v18, %v995_v39  ;;  %v926_v23 = vmul.f32 %v1946_v60, %v922_v13  ;;  %v933_v25 = vmul.f32 %v1931_v46, %v929_v14 }
  0xe7   :  { %v1009_v52 = vadd.f32 -0.0036734284, %v1005_v42  ;;  %v1016_v56 = vadd.f32 0.0057395077, %v1012_v47  ;;  %v940_v27 = vmul.f32 %v1919_v36, %v936_v16  ;;  %v927_v33 = vmul.f32 %v1955_v4, %v923_v21 }
  0xe8   :  { %v1006_v50 = vmul.f32 %v1950_v0, %v1002_v41  ;;  %v1003_v59 = vadd.f32 0.0013493432, %v999_v49  ;;  %v930_v34 = vadd.f32 -0.001253725, %v926_v23  ;;  %v937_v35 = vadd.f32 -0.0041776816, %v933_v25 }
  0xe9   :  { %v1013_v62 = vmul.f32 %v1936_v51, %v1009_v52  ;;  %v1020_v5 = vmul.f32 %v1924_v40, %v1016_v56  ;;  %v944_v38 = vadd.f32 0.24664073, %v940_v27  ;;  %v931_v43 = vadd.f32 -0.001253725, %v927_v33 }
  0xea   :  { %v1010_v61 = vadd.f32 -0.0036734284, %v1006_v50  ;;  %v1007_v7 = vmul.f32 %v1962_v18, %v1003_v59  ;;  %v934_v44 = vmul.f32 %v1946_v60, %v930_v34  ;;  %v941_v45 = vmul.f32 %v1931_v46, %v937_v35 }
  0xeb   :  { %v1017_v9 = vadd.f32 0.0057395077, %v1013_v62  ;;  %v1024_v15 = vadd.f32 -0.0076224613, %v1020_v5  ;;  %v948_v48 = vmul.f32 %v1919_v36, %v944_v38  ;;  %v935_v53 = vmul.f32 %v1955_v4, %v931_v43 }
  0xec   :  { %v1014_v8 = vmul.f32 %v1950_v0, %v1010_v61  ;;  %v1011_v17 = vadd.f32 -0.0036734284, %v1007_v7  ;;  %v938_v54 = vadd.f32 -0.0041776816, %v934_v44  ;;  %v945_v55 = vadd.f32 0.24664073, %v941_v45 }
  0xed   :  { %v1021_v20 = vmul.f32 %v1936_v51, %v1017_v9  ;;  %v1028_v26 = vmul.f32 %v1924_v40, %v1024_v15  ;;  %v939_v62 = vadd.f32 -0.0041776816, %v935_v53  ;;  %v952_v2 = vadd.f32 1.5014094, %v948_v48 }
  0xee   :  { %v1018_v19 = vadd.f32 0.0057395077, %v1014_v8  ;;  %v1015_v28 = vmul.f32 %v1962_v18, %v1011_v17  ;;  %v942_v63 = vmul.f32 %v1946_v60, %v938_v54  ;;  %v949_v1 = vmul.f32 %v1931_v46, %v945_v55 }
  0xef   :  { %v1025_v32 = vadd.f32 -0.0076224613, %v1021_v20  ;;  %v1032_v37 = vadd.f32 0.0094388705, %v1028_v26  ;;  %v943_v8 = vmul.f32 %v1955_v4, %v939_v62  ;;  %v1069_v26 = vlaneseq }
  0xf0   :  { %v1022_v31 = vmul.f32 %v1950_v0, %v1018_v19  ;;  %v1019_v39 = vadd.f32 0.0057395077, %v1015_v28  ;;  %v946_v9 = vadd.f32 0.24664073, %v942_v63  ;;  %v953_v13 = vadd.f32 1.5014094, %v949_v1 }
  0xf1   :  { %v1029_v42 = vmul.f32 %v1936_v51, %v1025_v32  ;;  %v1036_v47 = vmul.f32 %v1924_v40, %v1032_v37  ;;  %v947_v46 = vadd.f32 0.24664073, %v943_v8 }
  0xf2   :  { %v1026_v41 = vadd.f32 -0.0076224613, %v1022_v31  ;;  %v1023_v49 = vmul.f32 %v1962_v18, %v1019_v39  ;;  %v2024_v31 = vshrl.u32 %v1069_v26, 7 }
  0xf3   :  { %v1033_v52 = vadd.f32 0.0094388705, %v1029_v42  ;;  %v1040_v56 = vadd.f32 1.001674, %v1036_v47  ;;  %v951_v22 = vmul.f32 %v1955_v4, %v947_v46 }
  0xf4   :  { %v1030_v50 = vmul.f32 %v1950_v0, %v1026_v41  ;;  %v1027_v57 = vadd.f32 -0.0076224613, %v1023_v49  ;;  %v1073_v34 = vadd.s32 24, %v2024_v31  ;;  %v1604_v41 = vmov 0.0  }
  0xf5   :  { %v1037_v61 = vmul.f32 %v1936_v51, %v1033_v52  ;;  %v1044_v36 = vmul.f32 %v1924_v40, %v1040_v56  ;;  %v950_v40 = vmul.f32 %v1946_v60, %v946_v9 }
  0xf6   :  { %v1034_v59 = vadd.f32 0.0094388705, %v1030_v50  ;;  %v1031_v5 = vmul.f32 %v1962_v18, %v1027_v57  ;;  %vm1082_vm13 = vcmp.lt.s32.totalorder %v1073_v34, 30 }
  0xf7   :  { %v1041_v7 = vadd.f32 1.001674, %v1037_v61  ;;  %v1048_v11 = vadd.f32 2.8329768, %v1044_v36  ;;  %v954_v23 = vadd.f32 1.5014094, %v950_v40 }
  0xf8   :  { %v1038_v6 = vmul.f32 %v1950_v0, %v1034_v59  ;;  %v1035_v14 = vadd.f32 0.0094388705, %v1031_v5  ;;  %v2044_v42 = vsel %vm1082_vm13, 1.0, %v1604_v41  ;;  %vm1203_vm13 = vcmp.eq.s32.totalorder %v2024_v31, 3 }
  0xf9   :  { %v1045_v16 = vmul.f32 %v1936_v51, %v1041_v7  ;;  %v1056_v21 = vsel %vm1052_vm8, %v952_v2, %v1048_v11 }
  0xfa   :  { %v1042_v15 = vadd.f32 1.001674, %v1038_v6  ;;  %v1039_v17 = vmul.f32 %v1962_v18, %v1035_v14  ;;  %v1060_v25 = vmul.f32 %v1879_v58, %v1056_v21  ;;  %v619_v6 = vstv %s1394_s2 }
  0xfb   :  { %v1049_v20 = vadd.f32 2.8329768, %v1045_v16 }
  0xfc   :  { %v1046_v19 = vmul.f32 %v1950_v0, %v1042_v15  ;;  %v1043_v51 = vadd.f32 1.001674, %v1039_v17  ;;  %v2022_v60 = vmul.f32 1.4142135, %v1060_v25  ;;  %v955_v0 = vadd.f32 1.5014094, %v951_v22 }
  0xfd   :  { %v1057_v28 = vsel %vm1053_vm9, %v953_v13, %v1049_v20 }
  0xfe   :  { %v1050_v27 = vadd.f32 2.8329768, %v1046_v19  ;;  %v1061_v24 = vmul.f32 %v1889_v3, %v1057_v28  ;;  %v1047_v32 = vmul.f32 %v1962_v18, %v1043_v51  ;;  %v1116_v3 = vsel %vm1099_vm12, %v2022_v60, 0.0 }
  0xff   :  { %v1172_v30 = vmul.f32 %v2022_v60, %v2022_v60 }
 0x100   :  { %v1058_v4 = vsel %vm1054_vm10, %v954_v23, %v1050_v27  ;;  %v2030_v33 = vmul.f32 1.4142135, %v1061_v24  ;;  %v1051_v35 = vadd.f32 2.8329768, %v1047_v32  ;;  %vm1192_vm10 = vcmp.eq.s32.totalorder %v2024_v31, 0 }
 0x101   :  { %v1062_v58 = vmul.f32 %v1893_v10, %v1058_v4  ;;  %v1176_v52 = vsel %vm1099_vm12, %v1172_v30, 0.0 }
 0x102   :  { %v1117_v18 = vsel %vm1099_vm12, %v2030_v33, 0.0  ;;  %v1059_v29 = vsel %vm1055_vm11, %v955_v0, %v1051_v35  ;;  %vm1195_vm11 = vcmp.eq.s32.totalorder %v2024_v31, 1 }
 0x103   :  { %v2035_v37 = vmul.f32 1.4142135, %v1062_v58  ;;  %v1118_v38 = vadd.f32 %v1117_v18, %v1116_v3  ;;  %v1063_v10 = vmul.f32 %v1895_v12, %v1059_v29  ;;  %v1173_v12 = vmul.f32 %v2030_v33, %v2030_v33 }
 0x105   :  { %v1119_v39 = vsel %vm1099_vm12, %v2035_v37, 0.0  ;;  %v1067_v43 = vmul.f32 1.4142135, %v1063_v10  ;;  %v1174_v49 = vmul.f32 %v2035_v37, %v2035_v37  ;;  %v1177_v53 = vsel %vm1099_vm12, %v1173_v12, 0.0 }
 0x106   :  { %v1120_v44 = vadd.f32 %v1119_v39, %v1118_v38  ;;  %v1178_v54 = vadd.f32 %v1177_v53, %v1176_v52 }
 0x107   :  { %v2047_v45 = vmul.f32 %v2044_v42, %v1067_v43  ;;  %v1179_v55 = vsel %vm1099_vm12, %v1174_v49, 0.0 }
 0x108   :  { %v1180_v57 = vadd.f32 %v1179_v55, %v1178_v54 }
 0x109   :  { %v1121_v47 = vsel %vm1099_vm12, %v2047_v45, 0.0  ;;  %v1175_v50 = vmul.f32 %v2047_v45, %v2047_v45 }
 0x10a   :  { %v1122_v48 = vadd.f32 %v1121_v47, %v1120_v44 }
 0x10b   :  { %v1181_v56 = vsel %vm1099_vm12, %v1175_v50, 0.0 }
 0x10c   :  { %1123 = vadd.xlane.f32.xlu1 %v1122_v48  ;;  %v1182_v59 = vadd.f32 %v1181_v56, %v1180_v57 }
 0x110   :  { %1183 = vadd.xlane.f32.xlu1 %v1182_v59 }
 0x19a   :  { %v1273_v61 = vpop.f32.mrb[0].mxu0 }
 0x19b   :  { %v1317_v62 = vpop.f32.mrb[0].mxu1  ;;  %v1274_v63 = vpop.f32.mrb[1].mxu0 }
 0x19c   :  { %v1275_v1 = vadd.f32 %v1274_v63, %v1273_v61  ;;  %v1318_v36 = vpop.f32.mrb[1].mxu1 }
 0x19d   :  { %v1319_v2 = vadd.f32 %v1318_v36, %v1317_v62 }
 0x19e   :  { %v1276_v5 = vpop.f32.mrb[2].mxu0 }
 0x19f   :  { %v582_v7 = vadd.f32 %v1319_v2, %v1275_v1  ;;  %v1320_v8 = vpop.f32.mrb[2].mxu1  ;;  %v1277_v9 = vpop.f32.mrb[3].mxu0 }
 0x1a0   :  { %v1278_v11 = vadd.f32 %v1277_v9, %v1276_v5  ;;  %v1321_v13 = vpop.f32.mrb[3].mxu1 }
 0x1a1   :  { %v620_v14 = vmul.f32 %v619_v6, %v582_v7  ;;  %v1322_v15 = vadd.f32 %v1321_v13, %v1320_v8 }
 0x1a2   :  { %v1279_v16 = vpop.f32.mrb[4].mxu0 }
 0x1a3   :  { %v628_v46 = vmax.f32 %v620_v14, 1e-06  ;;  %v587_v40 = vadd.f32 %v1322_v15, %v1278_v11  ;;  %v1323_v17 = vpop.f32.mrb[4].mxu1  ;;  %v1280_v19 = vpop.f32.mrb[5].mxu0 }
 0x1a4   :  { %v1281_v20 = vadd.f32 %v1280_v19, %v1279_v16  ;;  %v1324_v21 = vpop.f32.mrb[5].mxu1 }
 0x1a5   :  { %v632_v22 = vmin.f32 %v628_v46, 0.999999  ;;  %v621_v23 = vmul.f32 %v619_v6, %v587_v40  ;;  %v1325_v25 = vadd.f32 %v1324_v21, %v1323_v17 }
 0x1a6   :  { %v1282_v26 = vpop.f32.mrb[6].mxu0 }
 0x1a7   :  { %v636_v51 = vmul.f32 2.0, %v632_v22  ;;  %v629_v27 = vmax.f32 %v621_v23, 1e-06  ;;  %v592_v28 = vadd.f32 %v1325_v25, %v1281_v20  ;;  %v1326_v24 = vpop.f32.mrb[6].mxu1  ;;  %v1283_v0 = vpop.f32.mrb[7].mxu0 }
 0x1a8   :  { %v1284_v32 = vadd.f32 %v1283_v0, %v1282_v26  ;;  %v1327_v4 = vpop.f32.mrb[7].mxu1 }
 0x1a9   :  { %v2063_v58 = vadd.f32 -1.0, %v636_v51  ;;  %v633_v34 = vmin.f32 %v629_v27, 0.999999  ;;  %v622_v3 = vmul.f32 %v619_v6, %v592_v28  ;;  %v1328_v35 = vadd.f32 %v1327_v4, %v1326_v24 }
 0x1ab   :  { %v644_v18 = vsub.f32 1.0, %v2063_v58  ;;  %v648_v29 = vadd.f32 1.0, %v2063_v58  ;;  %v637_v38 = vmul.f32 2.0, %v633_v34  ;;  %v630_v10 = vmax.f32 %v622_v3, 1e-06 }
 0x1ac   :  { %v597_v39 = vadd.f32 %v1328_v35, %v1284_v32 }
 0x1ad   :  { %v652_v41 = vmul.f32 %v648_v29, %v644_v18  ;;  %v2067_v43 = vadd.f32 -1.0, %v637_v38  ;;  %v634_v44 = vmin.f32 %v630_v10, 0.999999 }
 0x1ae   :  { %v623_v47 = vmul.f32 %v619_v6, %v597_v39 }
 0x1af   :  { %1587 = vlog2.f32 %v652_v41  ;;  %v645_v30 = vsub.f32 1.0, %v2067_v43  ;;  %v649_v12 = vadd.f32 1.0, %v2067_v43  ;;  %v638_v48 = vmul.f32 2.0, %v634_v44 }
 0x1b0   :  { %v631_v49 = vmax.f32 %v623_v47, 1e-06 }
 0x1b1   :  { %v653_v50 = vmul.f32 %v649_v12, %v645_v30  ;;  %v2071_v52 = vadd.f32 -1.0, %v638_v48 }
 0x1b2   :  { %v635_v53 = vmin.f32 %v631_v49, 0.999999 }
 0x1b3   :  { %1589 = vlog2.f32 %v653_v50  ;;  %v646_v54 = vsub.f32 1.0, %v2071_v52  ;;  %v650_v55 = vadd.f32 1.0, %v2071_v52 }
 0x1b4   :  { %v639_v56 = vmul.f32 2.0, %v635_v53 }
 0x1b5   :  { %v654_v57 = vmul.f32 %v650_v55, %v646_v54 }
 0x1b6   :  { %v2075_v59 = vadd.f32 -1.0, %v639_v56 }
 0x1b7   :  { %1591 = vlog2.f32 %v654_v57 }
 0x1b8   :  { %v647_v61 = vsub.f32 1.0, %v2075_v59  ;;  %v651_v62 = vadd.f32 1.0, %v2075_v59 }
 0x1b9   :  { %v1588_v63 = vpop.eup %1587 }
 0x1ba   :  { %v657_v1 = vmul.f32 0.6931472, %v1588_v63  ;;  %v655_v36 = vmul.f32 %v651_v62, %v647_v61 }
 0x1bc   :  { %v2079_v2 = vsub.f32 0.0, %v657_v1  ;;  %1593 = vlog2.f32 %v655_v36 }
 0x1bd   :  { %v1590_v5 = vpop.eup %1589 }
 0x1be   :  { %v2082_v6 = vadd.f32 -2.5, %v2079_v2  ;;  %1595 = vrsqrt.f32 %v2079_v2  ;;  %v659_v7 = vmul.f32 0.6931472, %v1590_v5  ;;  %vm738_vm14 = vcmp.eq.f32.partialorder %v2079_v2, inf }
 0x1bf   :  { %v741_v0 = vand.u32 2147483648, %v2079_v2  ;;  %vm740_vm15 = vcmp.eq.f32.partialorder %v2079_v2, 0.0  ;;  %vm832_vm6 = vcmp.lt.f32.partialorder %v2079_v2, 5.0 }
 0x1c0   :  { %v672_v8 = vmul.f32 2.8102264e-08, %v2082_v6  ;;  %v2086_v11 = vsub.f32 0.0, %v659_v7 }
 0x1c1   :  { %v1592_v9 = vpop.eup %1591 }
 0x1c2   :  { %v676_v13 = vadd.f32 3.4327394e-07, %v672_v8  ;;  %v661_v14 = vmul.f32 0.6931472, %v1592_v9  ;;  %v2089_v15 = vadd.f32 -2.5, %v2086_v11  ;;  %1597 = vrsqrt.f32 %v2086_v11 }
 0x1c3   :  { %vm745_vm0 = vcmp.eq.f32.partialorder %v2086_v11, inf  ;;  %v748_v41 = vand.u32 2147483648, %v2086_v11  ;;  %vm747_vm1 = vcmp.eq.f32.partialorder %v2086_v11, 0.0  ;;  %vm833_vm7 = vcmp.lt.f32.partialorder %v2086_v11, 5.0 }
 0x1c4   :  { %v680_v16 = vmul.f32 %v2082_v6, %v676_v13  ;;  %v2093_v46 = vsub.f32 0.0, %v661_v14  ;;  %v673_v40 = vmul.f32 2.8102264e-08, %v2089_v15 }
 0x1c6   :  { %v1594_v17 = vpop.eup %1593  ;;  %v684_v19 = vadd.f32 -3.5233877e-06, %v680_v16  ;;  %1599 = vrsqrt.f32 %v2093_v46  ;;  %v677_v20 = vadd.f32 3.4327394e-07, %v673_v40  ;;  %v2098_v22 = vadd.f32 -2.5, %v2093_v46 }
 0x1c7   :  { %v663_v21 = vmul.f32 0.6931472, %v1594_v17  ;;  %vm752_vm2 = vcmp.eq.f32.partialorder %v2093_v46, inf  ;;  %vm754_vm3 = vcmp.eq.f32.partialorder %v2093_v46, 0.0  ;;  %v755_v61 = vand.u32 2147483648, %v2093_v46 }
 0x1c8   :  { %v1596_v23 = vpop.eup %1595  ;;  %v688_v25 = vmul.f32 %v2082_v6, %v684_v19  ;;  %v681_v51 = vmul.f32 %v2089_v15, %v677_v20  ;;  %v674_v28 = vmul.f32 2.8102264e-08, %v2098_v22  ;;  %vm834_vm8 = vcmp.lt.f32.partialorder %v2093_v46, 5.0 }
 0x1c9   :  { %v737_v26 = vmul.f32 %v1596_v23, %v2079_v2  ;;  %v2103_v27 = vsub.f32 0.0, %v663_v21 }
 0x1ca   :  { %v692_v24 = vadd.f32 -4.3915065e-06, %v688_v25  ;;  %v685_v4 = vadd.f32 -3.5233877e-06, %v681_v51  ;;  %v678_v10 = vadd.f32 3.4327394e-07, %v674_v28 }
 0x1cb   :  { %v739_v32 = vsel %vm738_vm14, %v2079_v2, %v737_v26  ;;  %1601 = vrsqrt.f32 %v2103_v27  ;;  %v2116_v38 = vadd.f32 -2.5, %v2103_v27  ;;  %vm759_vm4 = vcmp.eq.f32.partialorder %v2103_v27, inf }
 0x1cc   :  { %v696_v34 = vmul.f32 %v2082_v6, %v692_v24  ;;  %v742_v3 = vsel %vm740_vm15, %v741_v0, %v739_v32  ;;  %v1598_v35 = vpop.eup %1597  ;;  %v689_v29 = vmul.f32 %v2089_v15, %v685_v4  ;;  %v682_v12 = vmul.f32 %v2098_v22, %v678_v10 }
 0x1cd   :  { %v2112_v18 = vadd.f32 -3.0, %v742_v3  ;;  %v744_v39 = vmul.f32 %v1598_v35, %v2086_v11  ;;  %v675_v30 = vmul.f32 2.8102264e-08, %v2116_v38  ;;  %vm761_vm5 = vcmp.eq.f32.partialorder %v2103_v27, 0.0 }
 0x1ce   :  { %v693_v47 = vadd.f32 -4.3915065e-06, %v689_v29  ;;  %v700_v49 = vadd.f32 0.00021858087, %v696_v34  ;;  %v686_v5 = vadd.f32 -3.5233877e-06, %v682_v12 }
 0x1cf   :  { %v768_v44 = vmul.f32 -0.00020021426, %v2112_v18  ;;  %v746_v50 = vsel %vm745_vm0, %v2086_v11, %v744_v39  ;;  %v679_v62 = vadd.f32 3.4327394e-07, %v675_v30  ;;  %v762_v26 = vand.u32 2147483648, %v2103_v27 }
 0x1d0   :  { %v1600_v48 = vpop.eup %1599  ;;  %v697_v54 = vmul.f32 %v2089_v15, %v693_v47  ;;  %v749_v55 = vsel %vm747_vm1, %v748_v41, %v746_v50  ;;  %v704_v14 = vmul.f32 %v2082_v6, %v700_v49  ;;  %v690_v40 = vmul.f32 %v2098_v22, %v686_v5 }
 0x1d1   :  { %v772_v53 = vadd.f32 0.00010095056, %v768_v44  ;;  %v751_v56 = vmul.f32 %v1600_v48, %v2093_v46  ;;  %v2129_v57 = vadd.f32 -3.0, %v749_v55  ;;  %v683_v8 = vmul.f32 %v2116_v38, %v679_v62 }
 0x1d2   :  { %v701_v1 = vadd.f32 0.00021858087, %v697_v54  ;;  %v694_v51 = vadd.f32 -4.3915065e-06, %v690_v40  ;;  %v708_v4 = vadd.f32 -0.001253725, %v704_v14 }
 0x1d3   :  { %v776_v63 = vmul.f32 %v2112_v18, %v772_v53  ;;  %v753_v36 = vsel %vm752_vm2, %v2093_v46, %v751_v56  ;;  %v769_v7 = vmul.f32 -0.00020021426, %v2129_v57  ;;  %v687_v23 = vadd.f32 -3.5233877e-06, %v683_v8 }
 0x1d4   :  { %v756_v9 = vsel %vm754_vm3, %v755_v61, %v753_v36  ;;  %v705_v19 = vmul.f32 %v2089_v15, %v701_v1  ;;  %v698_v3 = vmul.f32 %v2098_v22, %v694_v51  ;;  %v712_v49 = vmul.f32 %v2082_v6, %v708_v4 }
 0x1d5   :  { %v1602_v13 = vpop.eup %1601  ;;  %v780_v16 = vadd.f32 0.0013493432, %v776_v63  ;;  %v2140_v17 = vadd.f32 -3.0, %v756_v9  ;;  %v773_v20 = vadd.f32 0.00010095056, %v769_v7  ;;  %v691_v0 = vmul.f32 %v2116_v38, %v687_v23 }
 0x1d6   :  { %v758_v21 = vmul.f32 %v1602_v13, %v2103_v27  ;;  %v709_v29 = vadd.f32 -0.001253725, %v705_v19  ;;  %v702_v44 = vadd.f32 0.00021858087, %v698_v3  ;;  %v716_v14 = vadd.f32 -0.0041776816, %v712_v49 }
 0x1d7   :  { %v784_v25 = vmul.f32 %v2112_v18, %v780_v16  ;;  %v777_v28 = vmul.f32 %v2129_v57, %v773_v20  ;;  %v770_v32 = vmul.f32 -0.00020021426, %v2140_v17  ;;  %v695_v39 = vadd.f32 -4.3915065e-06, %v691_v0 }
 0x1d8   :  { %v760_v24 = vsel %vm759_vm4, %v2103_v27, %v758_v21  ;;  %v706_v53 = vmul.f32 %v2098_v22, %v702_v44  ;;  %v713_v55 = vmul.f32 %v2089_v15, %v709_v29  ;;  %v720_v0 = vmul.f32 %v2082_v6, %v716_v14 }
 0x1d9   :  { %v788_v34 = vadd.f32 -0.0036734284, %v784_v25  ;;  %v763_v35 = vsel %vm761_vm5, %v762_v26, %v760_v24  ;;  %v781_v10 = vadd.f32 0.0013493432, %v777_v28  ;;  %v699_v12 = vmul.f32 %v2116_v38, %v695_v39 }
 0x1da   :  { %v2155_v47 = vadd.f32 -3.0, %v763_v35  ;;  %v774_v48 = vadd.f32 0.00010095056, %v770_v32  ;;  %v710_v7 = vadd.f32 -0.001253725, %v706_v53  ;;  %vm835_vm9 = vcmp.lt.f32.partialorder %v2103_v27, 5.0 }
 0x1db   :  { %v792_v41 = vmul.f32 %v2112_v18, %v788_v34  ;;  %v785_v30 = vmul.f32 %v2129_v57, %v781_v10  ;;  %v703_v61 = vadd.f32 0.00021858087, %v699_v12  ;;  %v717_v16 = vadd.f32 -0.0041776816, %v713_v55 }
 0x1dc   :  { %v771_v54 = vmul.f32 -0.00020021426, %v2155_v47  ;;  %v778_v62 = vmul.f32 %v2140_v17, %v774_v48  ;;  %v714_v26 = vmul.f32 %v2098_v22, %v710_v7  ;;  %v724_v12 = vadd.f32 0.24664073, %v720_v0 }
 0x1dd   :  { %v796_v50 = vadd.f32 0.0057395077, %v792_v41  ;;  %v789_v56 = vadd.f32 -0.0036734284, %v785_v30  ;;  %v707_v5 = vmul.f32 %v2116_v38, %v703_v61  ;;  %v721_v32 = vmul.f32 %v2089_v15, %v717_v16 }
 0x1de   :  { %v775_v1 = vadd.f32 0.00010095056, %v771_v54  ;;  %v782_v8 = vadd.f32 0.0013493432, %v778_v62  ;;  %v718_v39 = vadd.f32 -0.0041776816, %v714_v26 }
 0x1df   :  { %v800_v63 = vmul.f32 %v2112_v18, %v796_v50  ;;  %v793_v36 = vmul.f32 %v2129_v57, %v789_v56  ;;  %v711_v21 = vadd.f32 -0.001253725, %v707_v5  ;;  %v725_v48 = vadd.f32 0.24664073, %v721_v32 }
 0x1e0   :  { %v779_v13 = vmul.f32 %v2155_v47, %v775_v1  ;;  %v786_v19 = vmul.f32 %v2140_v17, %v782_v8  ;;  %v722_v61 = vmul.f32 %v2098_v22, %v718_v39  ;;  %v728_v1 = vmul.f32 %v2082_v6, %v724_v12 }
 0x1e1   :  { %v804_v9 = vadd.f32 -0.0076224613, %v800_v63  ;;  %v797_v40 = vadd.f32 0.0057395077, %v793_v36  ;;  %v715_v35 = vmul.f32 %v2116_v38, %v711_v21  ;;  %v729_v36 = vmul.f32 %v2089_v15, %v725_v48 }
 0x1e2   :  { %v783_v23 = vadd.f32 0.0013493432, %v779_v13  ;;  %v790_v51 = vadd.f32 -0.0036734284, %v786_v19  ;;  %v726_v14 = vadd.f32 0.24664073, %v722_v61 }
 0x1e3   :  { %v808_v20 = vmul.f32 %v2112_v18, %v804_v9  ;;  %v801_v25 = vmul.f32 %v2129_v57, %v797_v40  ;;  %v719_v53 = vadd.f32 -0.0041776816, %v715_v35  ;;  %v732_v19 = vadd.f32 1.5014094, %v728_v1 }
 0x1e4   :  { %v787_v24 = vmul.f32 %v2155_v47, %v783_v23  ;;  %v794_v34 = vmul.f32 %v2140_v17, %v790_v51  ;;  %v730_v51 = vmul.f32 %v2098_v22, %v726_v14  ;;  %vm1207_vm14 = vcmp.eq.s32.totalorder %v2024_v31, 4 }
 0x1e5   :  { %v812_v28 = vadd.f32 0.0094388705, %v808_v20  ;;  %v805_v4 = vadd.f32 -0.0076224613, %v801_v25  ;;  %v723_v8 = vmul.f32 %v2116_v38, %v719_v53  ;;  %v733_v20 = vadd.f32 1.5014094, %v729_v36 }
 0x1e6   :  { %v791_v29 = vadd.f32 -0.0036734284, %v787_v24  ;;  %v798_v41 = vadd.f32 0.0057395077, %v794_v34  ;;  %v734_v34 = vadd.f32 1.5014094, %v730_v51 }
 0x1e7   :  { %v816_v3 = vmul.f32 %v2112_v18, %v812_v28  ;;  %v809_v10 = vmul.f32 %v2129_v57, %v805_v4  ;;  %v727_v15 = vadd.f32 0.24664073, %v723_v8 }
 0x1e8   :  { %v795_v30 = vmul.f32 %v2155_v47, %v791_v29  ;;  %v802_v50 = vmul.f32 %v2140_v17, %v798_v41 }
 0x1e9   :  { %v820_v44 = vadd.f32 1.001674, %v816_v3  ;;  %v813_v49 = vadd.f32 0.0094388705, %v809_v10  ;;  %v731_v4 = vmul.f32 %v2116_v38, %v727_v15 }
 0x1ea   :  { %v799_v54 = vadd.f32 0.0057395077, %v795_v30  ;;  %v806_v62 = vadd.f32 -0.0076224613, %v802_v50 }
 0x1eb   :  { %v824_v55 = vmul.f32 %v2112_v18, %v820_v44  ;;  %v817_v56 = vmul.f32 %v2129_v57, %v813_v49  ;;  %v735_v29 = vadd.f32 1.5014094, %v731_v4 }
 0x1ec   :  { %v803_v63 = vmul.f32 %v2155_v47, %v799_v54  ;;  %v810_v7 = vmul.f32 %v2140_v17, %v806_v62 }
 0x1ed   :  { %v821_v5 = vadd.f32 1.001674, %v817_v56  ;;  %v828_v13 = vadd.f32 2.8329768, %v824_v55 }
 0x1ee   :  { %v807_v9 = vadd.f32 -0.0076224613, %v803_v63  ;;  %v814_v16 = vadd.f32 0.0094388705, %v810_v7 }
 0x1ef   :  { %v825_v18 = vmul.f32 %v2129_v57, %v821_v5  ;;  %v836_v25 = vsel %vm832_vm6, %v732_v19, %v828_v13 }
 0x1f0   :  { %v811_v40 = vmul.f32 %v2155_v47, %v807_v9  ;;  %v818_v6 = vmul.f32 %v2140_v17, %v814_v16  ;;  %v840_v32 = vmul.f32 %v2063_v58, %v836_v25 }
 0x1f1   :  { %v829_v21 = vadd.f32 2.8329768, %v825_v18  ;;  %v1124_v18 = vpop.xlane.xlu1 %1123 }
 0x1f2   :  { %v815_v23 = vadd.f32 0.0094388705, %v811_v40  ;;  %v822_v57 = vadd.f32 1.001674, %v818_v6  ;;  %v1125_v14 = vrot.slane %v1124_v18, 4 }
 0x1f3   :  { %v837_v26 = vsel %vm833_vm7, %v733_v20, %v829_v21 }
 0x1f4   :  { %v819_v28 = vmul.f32 %v2155_v47, %v815_v23  ;;  %v841_v24 = vmul.f32 %v2067_v43, %v837_v26  ;;  %v826_v0 = vmul.f32 %v2140_v17, %v822_v57  ;;  %v844_v43 = vmul.f32 1.4142135, %v840_v32 }
 0x1f5   :  { %v1126_v16 = vadd.f32 %v1125_v14, %v1124_v18  ;;  %v1184_v40 = vpop.xlane.xlu1 %1183 }
 0x1f6   :  { %v823_v2 = vadd.f32 1.001674, %v819_v28  ;;  %v830_v11 = vadd.f32 2.8329768, %v826_v0  ;;  %v845_v22 = vmul.f32 1.4142135, %v841_v24  ;;  %v1152_v54 = vmul.f32 %v844_v43, %v844_v43 }
 0x1f7   :  { %v1100_v30 = vsel %vm1099_vm12, %v844_v43, 0.0  ;;  %v1127_v19 = vrot.slane %v1126_v16, 2  ;;  %v1185_v21 = vrot.slane %v1184_v40, 4 }
 0x1f8   :  { %v827_v3 = vmul.f32 %v2155_v47, %v823_v2  ;;  %v838_v35 = vsel %vm834_vm8, %v734_v34, %v830_v11  ;;  %v1101_v41 = vsel %vm1099_vm12, %v845_v22, 0.0  ;;  %v1133_v44 = vmul.f32 %v2030_v33, %v845_v22 }
 0x1f9   :  { %v842_v39 = vmul.f32 %v2071_v52, %v838_v35  ;;  %v1132_v47 = vmul.f32 %v2022_v60, %v844_v43  ;;  %v1102_v48 = vadd.f32 %v1101_v41, %v1100_v30  ;;  %v1153_v50 = vmul.f32 %v845_v22, %v845_v22 }
 0x1fa   :  { %v831_v10 = vadd.f32 2.8329768, %v827_v3  ;;  %v1137_v49 = vsel %vm1099_vm12, %v1133_v44, 0.0  ;;  %v1156_v36 = vsel %vm1099_vm12, %v1152_v54, 0.0  ;;  %v1186_v23 = vadd.f32 %v1185_v21, %v1184_v40 }
 0x1fb   :  { %v846_v58 = vmul.f32 1.4142135, %v842_v39  ;;  %v1136_v53 = vsel %vm1099_vm12, %v1132_v47, 0.0  ;;  %v1128_v26 = vadd.f32 %v1127_v19, %v1126_v16 }
 0x1fc   :  { %v839_v17 = vsel %vm835_vm9, %v735_v29, %v831_v10  ;;  %v1138_v62 = vadd.f32 %v1137_v49, %v1136_v53  ;;  %v1187_v0 = vrot.slane %v1186_v23, 2 }
 0x1fd   :  { %v843_v38 = vmul.f32 %v2075_v59, %v839_v17  ;;  %v1103_v12 = vsel %vm1099_vm12, %v846_v58, 0.0  ;;  %v1134_v52 = vmul.f32 %v2035_v37, %v846_v58  ;;  %v1154_v56 = vmul.f32 %v846_v58, %v846_v58 }
 0x1fe   :  { %v1104_v59 = vadd.f32 %v1103_v12, %v1102_v48  ;;  %v1129_v4 = vrot.slane %v1128_v26, 1  ;;  %v1188_v29 = vadd.f32 %v1187_v0, %v1186_v23 }
 0x1ff   :  { %v847_v46 = vmul.f32 1.4142135, %v843_v38  ;;  %v1139_v55 = vsel %vm1099_vm12, %v1134_v52, 0.0  ;;  %v1159_v5 = vsel %vm1099_vm12, %v1154_v56, 0.0 }
 0x200   :  { %v1140_v1 = vadd.f32 %v1139_v55, %v1138_v62  ;;  %v1130_v10 = vadd.f32 %v1129_v4, %v1128_v26  ;;  %v1189_v38 = vrot.slane %v1188_v29, 1 }
 0x201   :  { %v1094_v27 = vmul.f32 %v2044_v42, %v847_v46  ;;  %v1157_v42 = vsel %vm1099_vm12, %v1153_v50, 0.0 }
 0x202   :  { %v1158_v8 = vadd.f32 %v1157_v42, %v1156_v36  ;;  %v1190_v47 = vadd.f32 %v1189_v38, %v1188_v29 }
 0x203   :  { %v1105_v33 = vsel %vm1099_vm12, %v1094_v27, 0.0  ;;  %v1135_v60 = vmul.f32 %v2047_v45, %v1094_v27  ;;  %v1155_v63 = vmul.f32 %v1094_v27, %v1094_v27 }
 0x204   :  { %v1106_v61 = vadd.f32 %v1105_v33, %v1104_v59  ;;  %v1160_v9 = vadd.f32 %v1159_v5, %v1158_v8 }
 0x205   :  { %v1141_v37 = vsel %vm1099_vm12, %v1135_v60, 0.0  ;;  %v1161_v45 = vsel %vm1099_vm12, %v1155_v63, 0.0  ;;  %vm1199_vm12 = vcmp.eq.s32.totalorder %v2024_v31, 2 }
 0x206   :  { %1107 = vadd.xlane.f32.xlu0 %v1106_v61  ;;  %v1142_v7 = vadd.f32 %v1141_v37, %v1140_v1  ;;  %v1162_v13 = vadd.f32 %v1161_v45, %v1160_v9 }
 0x20a   :  { %1143 = vadd.xlane.f32.xlu0 %v1142_v7 }
 0x20e   :  { %1163 = vadd.xlane.f32.xlu0 %v1162_v13 }
 0x293   :  { %v1108_v20 = vpop.xlane.xlu0 %1107 }
 0x294   :  { %v1109_v6 = vrot.slane %v1108_v20, 4 }
 0x296   :  { %v1110_v15 = vadd.f32 %v1109_v6, %v1108_v20 }
 0x297   :  { %v1144_v25 = vpop.xlane.xlu0 %1143 }
 0x298   :  { %v1111_v51 = vrot.slane %v1110_v15, 2  ;;  %v1145_v57 = vrot.slane %v1144_v25, 4 }
 0x29a   :  { %v1146_v28 = vadd.f32 %v1145_v57, %v1144_v25  ;;  %v1112_v24 = vadd.f32 %v1111_v51, %v1110_v15 }
 0x29b   :  { %v1164_v32 = vpop.xlane.xlu0 %1163 }
 0x29c   :  { %v1147_v2 = vrot.slane %v1146_v28, 2  ;;  %v1165_v34 = vrot.slane %v1164_v32, 4  ;;  %v1113_v11 = vrot.slane %v1112_v24, 1 }
 0x29e   :  { %v1166_v3 = vadd.f32 %v1165_v34, %v1164_v32  ;;  %v1114_v35 = vadd.f32 %v1113_v11, %v1112_v24  ;;  %v1148_v22 = vadd.f32 %v1147_v2, %v1146_v28 }
 0x2a0   :  { %v1167_v39 = vrot.slane %v1166_v3, 2  ;;  %1395 = vpush %v1114_v35  ;;  %v1149_v43 = vrot.slane %v1148_v22, 1 }
 0x2a1   :  { %1397 = vpush %v1130_v10 }
 0x2a2   :  { %v1168_v17 = vadd.f32 %v1167_v39, %v1166_v3  ;;  %v1150_v58 = vadd.f32 %v1149_v43, %v1148_v22 }
 0x2a4   :  { %1399 = vpush %v1150_v58  ;;  %v1169_v41 = vrot.slane %v1168_v17, 1 }
 0x2a6   :  { %v1170_v44 = vadd.f32 %v1169_v41, %v1168_v17 }
 0x2a8   :  { %1401 = vpush %v1170_v44 }
 0x2a9   :  { %1403 = vpush %v1190_v47 }
 0x2d1   :  { %s1396_s24 = spop %1395 }
 0x2d2   :  { %v1193_v46 = vstv %s1396_s24  ;;  %s1398_s25 = spop %1397 }
 0x2d3   :  { %v1196_v30 = vstv %s1398_s25  ;;  %v1194_v12 = vsel %vm1192_vm10, %v1193_v46, 0.0 }
 0x2d4   :  { %v1197_v52 = vsel %vm1195_vm11, %v1196_v30, 0.0 }
 0x2d5   :  { %s1400_s26 = spop %1399  ;;  %v1198_v49 = vadd.f32 %v1197_v52, %v1194_v12 }
 0x2d6   :  { %v1200_v48 = vstv %s1400_s26 }
 0x2d7   :  { %v1201_v27 = vsel %vm1199_vm12, %v1200_v48, 0.0 }
 0x2d8   :  { %v1202_v50 = vadd.f32 %v1201_v27, %v1198_v49 }
 0x2d9   :  { %s1402_s27 = spop %1401 }
 0x2da   :  { %v1204_v59 = vstv %s1402_s27  ;;  %s1404_s28 = spop %1403 }
 0x2db   :  { %v1205_v53 = vsel %vm1203_vm13, %v1204_v59, 0.0  ;;  %v1208_v54 = vstv %s1404_s28 }
 0x2dc   :  { %v1206_v33 = vadd.f32 %v1205_v53, %v1202_v50  ;;  %v1209_v60 = vsel %vm1207_vm14, %v1208_v54, 0.0 }
 0x2de   :  { %v1210_v55 = vadd.f32 %v1209_v60, %v1206_v33 }
 0x2e0   :  { %1211 = vst [vmem:[%s2234_s4] sm:$0xff] %v1210_v55 }

</bundles_post_ra>
